<compile_context>
chip_gen: v7x
topology: tpu7x:2x2x1
jax: 0.10.0
libtpu: 0.0.40
codegen_flags: <defaults>
</compile_context>

<pallas_src>
import functools
import math

import jax
import jax.numpy as jnp
from jax.experimental import pallas as pl
from jax.experimental.pallas import tpu as pltpu


# --------------------------- fused Pallas kernel ------------------------------

def _offset_gen_kernel(x_ref, wq_ref, bq_ref, wk_ref, bk_ref, m_ref, o_ref,
                       *, num_heads, ws2, ck):
    """Fused 1x1-conv + windowed q @ k^T for a block of WB windows.

    x_ref : (WB, ws2, dim)      window-major pixels (window, pixel-in-window, channel)
    wq_ref: (dim, nh*ws2)       q weights  (temperature folded in)
    bq_ref: (1,  nh*ws2)        q bias     (temperature folded in)
    wk_ref: (dim, out_dim)      k weights
    bk_ref: (1,  out_dim)       k bias
    m_ref : (WB*ws2, 1)         1.0 for valid pixels, 0.0 for spatial padding
    o_ref : (WB, out_dim, ws2)  out[w, head*ck + c, h*ws + w']
    """
    wb = x_ref.shape[0]
    dim = x_ref.shape[2]
    x = x_ref[...].reshape(wb * ws2, dim)

    # 1x1 conv -> q / k channels (single big MXU matmul for the whole window block).
    q = jnp.dot(x, wq_ref[...], preferred_element_type=jnp.float32) + bq_ref[...]
    k = jnp.dot(x, wk_ref[...], preferred_element_type=jnp.float32) + bk_ref[...]
    # Zero out k rows of padded pixels so they don't contribute to the window sum
    # (reproduces "qk zero-padded after the conv" semantics).
    k = k * m_ref[...]

    # Per-window, per-head attention: out[c, d] = sum_s k[s, c] * q[s, d]
    for h in range(num_heads):
        q_h = q[:, h * ws2:(h + 1) * ws2]          # (WB*ws2, ws2)   [s, d]
        k_h = k[:, h * ck:(h + 1) * ck]            # (WB*ws2, ck)    [s, c]
        for w in range(wb):
            r0 = w * ws2
            o_wh = jnp.dot(k_h[r0:r0 + ws2, :].T,  # (ck, ws2)
                           q_h[r0:r0 + ws2, :],    # (ws2, ws2)
                           preferred_element_type=jnp.float32)      # (ck, ws2)
            o_ref[w, h * ck:(h + 1) * ck, :] = o_wh.astype(o_ref.dtype)


def _choose_windows_per_step(num_windows, target):
    """Largest divisor of num_windows <= target, keeping >= 2 grid steps (megacore)."""
    wb = max(1, min(target, num_windows))
    while wb > 1 and num_windows % wb:
        wb -= 1
    if wb == num_windows and num_windows > 1:
        wb = max(1, wb // 2)
        while wb > 1 and num_windows % wb:
            wb -= 1
    return wb


# ------------------------------ Module ---------------------------------------

class OffsetGenPallas:
    """JAX/Pallas equivalent of Offset_Gen.forward (NHWC in, NHWC out)."""

    def __init__(self, dim, out_dim, num_heads, window_size=8, key=None,
                 windows_per_step=8):
        assert out_dim % num_heads == 0
        self.dim = dim
        self.out_dim = out_dim
        self.num_heads = num_heads
        self.window_size = window_size
        self.windows_per_step = windows_per_step
        ws2 = window_size * window_size
        self.n = ws2 * num_heads
        cout = self.n + out_dim

        k1, k2 = jax.random.split(key)
        # nn.Conv2d(dim, cout, 1, bias=True): weight (cout, dim, 1, 1), bias (cout,),
        # stored here transposed as (dim, cout) / (1, cout) for the channel matmul.
        self.w = jax.random.normal(k1, (dim, cout), jnp.float32) / math.sqrt(dim)
        self.b = jax.random.normal(k2, (1, cout), jnp.float32) * 0.1
        # temperature = ones(1,1,1,num_heads,1,1) / sqrt(dim)  (per-head scalar)
        self.temperature = jnp.full((num_heads,), 1.0 / math.sqrt(dim), jnp.float32)

        # Fold temperature into the q columns:  (x @ wq + bq) * t == x @ (wq*t) + bq*t.
        scale = jnp.repeat(self.temperature, ws2)[None, :]           # (1, n)
        self.wq = self.w[:, :self.n] * scale                         # (dim, n)
        self.bq = self.b[:, :self.n] * scale                         # (1, n)
        self.wk = self.w[:, self.n:]                                 # (dim, out_dim)
        self.bk = self.b[:, self.n:]                                 # (1, out_dim)
        # NOTE: qk_norm is statically False in the reference module, so it is omitted.

    def __call__(self, x):
        B, H, W, C = x.shape
        assert C == self.dim
        ws = self.window_size
        nh = self.num_heads
        ws2 = ws * ws
        ck = self.out_dim // nh

        # ---- check_image_size: pad spatial dims to a multiple of window_size ----
        # TODO(synk): check_image_size() source not given; assuming it zero-pads qk
        # (reproduced here by zero-padding x and masking k for padded pixels in-kernel).
        pad_h = (-H) % ws
        pad_w = (-W) % ws
        Hp, Wp = H + pad_h, W + pad_w
        valid = jnp.ones((B, H, W), jnp.float32)
        if pad_h or pad_w:
            x = jnp.pad(x, ((0, 0), (0, pad_h), (0, pad_w), (0, 0)))
            valid = jnp.pad(valid, ((0, 0), (0, pad_h), (0, pad_w)))
        h1, w1 = Hp // ws, Wp // ws
        G = B * h1 * w1

        # ---- window-major rearrange (layout plumbing for the strided '(h h1)(w w1)') --
        xw = x.reshape(B, ws, h1, ws, w1, C)
        xw = xw.transpose(0, 2, 4, 1, 3, 5).reshape(G, ws2, C)
        mw = valid.reshape(B, ws, h1, ws, w1)
        mw = mw.transpose(0, 2, 4, 1, 3).reshape(G * ws2, 1)

        # ---- fused conv1x1 + windowed q @ k^T (Pallas) ----
        wb = _choose_windows_per_step(G, self.windows_per_step)
        kernel = functools.partial(_offset_gen_kernel,
                                   num_heads=nh, ws2=ws2, ck=ck)
        out = pl.pallas_call(
            kernel,
            out_shape=jax.ShapeDtypeStruct((G, self.out_dim, ws2), jnp.float32),
            grid=(G // wb,),
            in_specs=[
                pl.BlockSpec((wb, ws2, C), lambda g: (g, 0, 0)),          # x windows
                pl.BlockSpec((C, self.n), lambda g: (0, 0)),              # wq (resident)
                pl.BlockSpec((1, self.n), lambda g: (0, 0)),              # bq
                pl.BlockSpec((C, self.out_dim), lambda g: (0, 0)),        # wk
                pl.BlockSpec((1, self.out_dim), lambda g: (0, 0)),        # bk
                pl.BlockSpec((wb * ws2, 1), lambda g: (g, 0)),            # valid mask
            ],
            out_specs=pl.BlockSpec((wb, self.out_dim, ws2), lambda g: (g, 0, 0)),
            compiler_params=pltpu.CompilerParams(
                dimension_semantics=("parallel",)),
        )(xw, self.wq, self.bq, self.wk, self.bk, mw)

        # ---- inverse rearrange: (window, head*ck, pixel) -> NHWC (layout plumbing) ----
        out = out.reshape(B, h1, w1, self.out_dim, ws, ws)
        out = out.transpose(0, 1, 4, 2, 5, 3).reshape(B, Hp, Wp, self.out_dim)
        return out[:, :H, :W, :]


# ----------------------- pure-JAX NCHW reference ------------------------------

def reference_nchw(x, w, b, temp, n_total, out_dim, nh, ws):
    B, H, W, C = x.shape
    qk = jnp.einsum("bhwc,co->bhwo", x, w) + b[0]                  # (B,H,W,Cout)
    qk = jnp.transpose(qk, (0, 3, 1, 2))                           # NCHW
    pad_h, pad_w = (-H) % ws, (-W) % ws
    qk = jnp.pad(qk, ((0, 0), (0, 0), (0, pad_h), (0, pad_w)))     # assumed zero pad
    Hp, Wp = H + pad_h, W + pad_w
    h1, w1 = Hp // ws, Wp // ws
    ws2 = ws * ws
    ck = out_dim // nh
    qc, kc = qk[:, :n_total], qk[:, n_total:]

    def re_in(t, c_inner):
        t = t.reshape(B, nh, c_inner, ws, h1, ws, w1)
        t = t.transpose(0, 4, 6, 1, 2, 3, 5)                       # b h1 w1 head c h w
        return t.reshape(B, h1, w1, nh, c_inner, ws2)

    q = re_in(qc, ws2)
    k = re_in(kc, ck)
    out = jnp.einsum("bxyhcp,bxyhkp->bxyhck", q, k)
    out = out * temp.reshape(1, 1, 1, nh, 1, 1)
    out = out.reshape(B, h1, w1, nh, ws, ws, ck)
    out = out.transpose(0, 3, 6, 1, 4, 2, 5).reshape(B, nh * ck, Hp, Wp)
    out = out[:, :, :H, :W]
    return jnp.transpose(out, (0, 2, 3, 1))                        # NHWC


# ------------------------------- main -----------------------------------------

if __name__ == "__main__":
    key = jax.random.PRNGKey(0)
    kx, kp = jax.random.split(key)

    B, H, W = 2, 16, 16
    dim, out_dim, num_heads, window_size = 32, 8, 2, 8

    mod = OffsetGenPallas(dim, out_dim, num_heads, window_size, key=kp)

    # Case 1: H, W multiples of window_size (no-padding path).
    x = jax.random.normal(kx, (B, H, W, dim), jnp.float32)
    y = jax.block_until_ready(mod(x))
    assert y.shape == (B, H, W, out_dim), y.shape
    y_ref = reference_nchw(x, mod.w, mod.b, mod.temperature,
                           mod.n, out_dim, num_heads, window_size)
    err = float(jnp.max(jnp.abs(y - y_ref)))
    assert jnp.allclose(y, y_ref, atol=2e-4, rtol=2e-4), err

    # Case 2: non-multiple spatial size (exercises the padding/mask path).
    x2 = jax.random.normal(kx, (B, 12, 13, dim), jnp.float32)
    y2 = jax.block_until_ready(mod(x2))
    assert y2.shape == (B, 12, 13, out_dim), y2.shape
    y2_ref = reference_nchw(x2, mod.w, mod.b, mod.temperature,
                            mod.n, out_dim, num_heads, window_size)
    err2 = float(jnp.max(jnp.abs(y2 - y2_ref)))
    assert jnp.allclose(y2, y2_ref, atol=2e-4, rtol=2e-4), err2

    print("KERNEL_OK")
</pallas_src>

<mosaic_0001>
module attributes {stable_mosaic.version = 11 : i64} {
  func.func @_offset_gen_kernel(%arg0: i32, %arg1: memref<4x64x32xf32, #tpu.memory_space<vmem>>, %arg2: memref<32x128xf32, #tpu.memory_space<vmem>>, %arg3: memref<1x128xf32, #tpu.memory_space<vmem>>, %arg4: memref<32x8xf32, #tpu.memory_space<vmem>>, %arg5: memref<1x8xf32, #tpu.memory_space<vmem>>, %arg6: memref<256x1xf32, #tpu.memory_space<vmem>>, %arg7: memref<4x8x64xf32, #tpu.memory_space<vmem>>) attributes {dimension_semantics = [#tpu.dimension_semantics<parallel>], iteration_bounds = array<i64: 2>, scalar_prefetch = 0 : i64, scratch_operands = 0 : i64, tpu.core_type = #tpu.core_type<tc>, window_params = [{transform_indices = @transform_0, window_bounds = array<i64: 4, 64, 32>}, {pipeline_mode = #tpu.pipeline_mode<synchronous>, transform_indices = @transform_1, window_bounds = array<i64: 32, 128>}, {pipeline_mode = #tpu.pipeline_mode<synchronous>, transform_indices = @transform_2, window_bounds = array<i64: 1, 128>}, {pipeline_mode = #tpu.pipeline_mode<synchronous>, transform_indices = @transform_3, window_bounds = array<i64: 32, 8>}, {pipeline_mode = #tpu.pipeline_mode<synchronous>, transform_indices = @transform_4, window_bounds = array<i64: 1, 8>}, {transform_indices = @transform_5, window_bounds = array<i64: 256, 1>}, {transform_indices = @transform_6, window_bounds = array<i64: 4, 8, 64>}]} {
    %c0 = arith.constant 0 : index
    %c0_0 = arith.constant 0 : index
    %c0_1 = arith.constant 0 : index
    %0 = vector.load %arg1[%c0, %c0_0, %c0_1] : memref<4x64x32xf32, #tpu.memory_space<vmem>>, vector<4x64x32xf32>
    %1 = vector.shape_cast %0 : vector<4x64x32xf32> to vector<256x32xf32>
    %c0_2 = arith.constant 0 : index
    %c0_3 = arith.constant 0 : index
    %2 = vector.load %arg2[%c0_2, %c0_3] : memref<32x128xf32, #tpu.memory_space<vmem>>, vector<32x128xf32>
    %cst = arith.constant dense<0.000000e+00> : vector<256x128xf32>
    %3 = tpu.matmul %1, %2, %cst {dimension_numbers = #tpu.dot_dimension_numbers<[1], [0], [0], [1], [0, 0, 1, 1], [], []>} : vector<256x32xf32>, vector<32x128xf32>, vector<256x128xf32> -> vector<256x128xf32>
    %c0_4 = arith.constant 0 : index
    %c0_5 = arith.constant 0 : index
    %4 = vector.load %arg3[%c0_4, %c0_5] : memref<1x128xf32, #tpu.memory_space<vmem>>, vector<1x128xf32>
    %5 = vector.broadcast %4 : vector<1x128xf32> to vector<256x128xf32>
    %6 = arith.addf %3, %5 : vector<256x128xf32>
    %c0_6 = arith.constant 0 : index
    %c0_7 = arith.constant 0 : index
    %7 = vector.load %arg4[%c0_6, %c0_7] : memref<32x8xf32, #tpu.memory_space<vmem>>, vector<32x8xf32>
    %cst_8 = arith.constant dense<0.000000e+00> : vector<256x8xf32>
    %8 = tpu.matmul %1, %7, %cst_8 {dimension_numbers = #tpu.dot_dimension_numbers<[1], [0], [0], [1], [0, 0, 1, 1], [], []>} : vector<256x32xf32>, vector<32x8xf32>, vector<256x8xf32> -> vector<256x8xf32>
    %c0_9 = arith.constant 0 : index
    %c0_10 = arith.constant 0 : index
    %9 = vector.load %arg5[%c0_9, %c0_10] : memref<1x8xf32, #tpu.memory_space<vmem>>, vector<1x8xf32>
    %10 = vector.broadcast %9 : vector<1x8xf32> to vector<256x8xf32>
    %11 = arith.addf %8, %10 : vector<256x8xf32>
    %c0_11 = arith.constant 0 : index
    %c0_12 = arith.constant 0 : index
    %12 = vector.load %arg6[%c0_11, %c0_12] : memref<256x1xf32, #tpu.memory_space<vmem>>, vector<256x1xf32>
    %13 = vector.broadcast %12 : vector<256x1xf32> to vector<256x8xf32>
    %14 = arith.mulf %11, %13 : vector<256x8xf32>
    %15 = vector.extract_strided_slice %6 {offsets = [0, 0], sizes = [256, 64], strides = [1, 1]} : vector<256x128xf32> to vector<256x64xf32>
    %16 = vector.extract_strided_slice %14 {offsets = [0, 0], sizes = [256, 4], strides = [1, 1]} : vector<256x8xf32> to vector<256x4xf32>
    %17 = vector.extract_strided_slice %16 {offsets = [0, 0], sizes = [64, 4], strides = [1, 1]} : vector<256x4xf32> to vector<64x4xf32>
    %18 = tpu.transpose %17, [1, 0] : vector<64x4xf32> -> vector<4x64xf32>
    %19 = vector.extract_strided_slice %15 {offsets = [0, 0], sizes = [64, 64], strides = [1, 1]} : vector<256x64xf32> to vector<64x64xf32>
    %cst_13 = arith.constant dense<0.000000e+00> : vector<4x64xf32>
    %20 = tpu.matmul %18, %19, %cst_13 {dimension_numbers = #tpu.dot_dimension_numbers<[1], [0], [0], [1], [0, 0, 1, 1], [], []>} : vector<4x64xf32>, vector<64x64xf32>, vector<4x64xf32> -> vector<4x64xf32>
    %c0_14 = arith.constant 0 : index
    %c0_15 = arith.constant 0 : index
    %c0_16 = arith.constant 0 : index
    %21 = vector.load %arg7[%c0_14, %c0_15, %c0_16] : memref<4x8x64xf32, #tpu.memory_space<vmem>>, vector<1x4x64xf32>
    %22 = vector.shape_cast %21 : vector<1x4x64xf32> to vector<4x64xf32>
    %23 = vector.shape_cast %20 : vector<4x64xf32> to vector<1x4x64xf32>
    tpu.vector_store %arg7[%c0_14, %c0_15, %c0_16], %23 {strides = array<i32>} : memref<4x8x64xf32, #tpu.memory_space<vmem>>, vector<1x4x64xf32>,
    %24 = vector.extract_strided_slice %16 {offsets = [64, 0], sizes = [64, 4], strides = [1, 1]} : vector<256x4xf32> to vector<64x4xf32>
    %25 = tpu.transpose %24, [1, 0] : vector<64x4xf32> -> vector<4x64xf32>
    %26 = vector.extract_strided_slice %15 {offsets = [64, 0], sizes = [64, 64], strides = [1, 1]} : vector<256x64xf32> to vector<64x64xf32>
    %cst_17 = arith.constant dense<0.000000e+00> : vector<4x64xf32>
    %27 = tpu.matmul %25, %26, %cst_17 {dimension_numbers = #tpu.dot_dimension_numbers<[1], [0], [0], [1], [0, 0, 1, 1], [], []>} : vector<4x64xf32>, vector<64x64xf32>, vector<4x64xf32> -> vector<4x64xf32>
    %c1 = arith.constant 1 : index
    %c0_18 = arith.constant 0 : index
    %c0_19 = arith.constant 0 : index
    %28 = vector.load %arg7[%c1, %c0_18, %c0_19] : memref<4x8x64xf32, #tpu.memory_space<vmem>>, vector<1x4x64xf32>
    %29 = vector.shape_cast %28 : vector<1x4x64xf32> to vector<4x64xf32>
    %30 = vector.shape_cast %27 : vector<4x64xf32> to vector<1x4x64xf32>
    tpu.vector_store %arg7[%c1, %c0_18, %c0_19], %30 {strides = array<i32>} : memref<4x8x64xf32, #tpu.memory_space<vmem>>, vector<1x4x64xf32>,
    %31 = vector.extract_strided_slice %16 {offsets = [128, 0], sizes = [64, 4], strides = [1, 1]} : vector<256x4xf32> to vector<64x4xf32>
    %32 = tpu.transpose %31, [1, 0] : vector<64x4xf32> -> vector<4x64xf32>
    %33 = vector.extract_strided_slice %15 {offsets = [128, 0], sizes = [64, 64], strides = [1, 1]} : vector<256x64xf32> to vector<64x64xf32>
    %cst_20 = arith.constant dense<0.000000e+00> : vector<4x64xf32>
    %34 = tpu.matmul %32, %33, %cst_20 {dimension_numbers = #tpu.dot_dimension_numbers<[1], [0], [0], [1], [0, 0, 1, 1], [], []>} : vector<4x64xf32>, vector<64x64xf32>, vector<4x64xf32> -> vector<4x64xf32>
    %c2 = arith.constant 2 : index
    %c0_21 = arith.constant 0 : index
    %c0_22 = arith.constant 0 : index
    %35 = vector.load %arg7[%c2, %c0_21, %c0_22] : memref<4x8x64xf32, #tpu.memory_space<vmem>>, vector<1x4x64xf32>
    %36 = vector.shape_cast %35 : vector<1x4x64xf32> to vector<4x64xf32>
    %37 = vector.shape_cast %34 : vector<4x64xf32> to vector<1x4x64xf32>
    tpu.vector_store %arg7[%c2, %c0_21, %c0_22], %37 {strides = array<i32>} : memref<4x8x64xf32, #tpu.memory_space<vmem>>, vector<1x4x64xf32>,
    %38 = vector.extract_strided_slice %16 {offsets = [192, 0], sizes = [64, 4], strides = [1, 1]} : vector<256x4xf32> to vector<64x4xf32>
    %39 = tpu.transpose %38, [1, 0] : vector<64x4xf32> -> vector<4x64xf32>
    %40 = vector.extract_strided_slice %15 {offsets = [192, 0], sizes = [64, 64], strides = [1, 1]} : vector<256x64xf32> to vector<64x64xf32>
    %cst_23 = arith.constant dense<0.000000e+00> : vector<4x64xf32>
    %41 = tpu.matmul %39, %40, %cst_23 {dimension_numbers = #tpu.dot_dimension_numbers<[1], [0], [0], [1], [0, 0, 1, 1], [], []>} : vector<4x64xf32>, vector<64x64xf32>, vector<4x64xf32> -> vector<4x64xf32>
    %c3 = arith.constant 3 : index
    %c0_24 = arith.constant 0 : index
    %c0_25 = arith.constant 0 : index
    %42 = vector.load %arg7[%c3, %c0_24, %c0_25] : memref<4x8x64xf32, #tpu.memory_space<vmem>>, vector<1x4x64xf32>
    %43 = vector.shape_cast %42 : vector<1x4x64xf32> to vector<4x64xf32>
    %44 = vector.shape_cast %41 : vector<4x64xf32> to vector<1x4x64xf32>
    tpu.vector_store %arg7[%c3, %c0_24, %c0_25], %44 {strides = array<i32>} : memref<4x8x64xf32, #tpu.memory_space<vmem>>, vector<1x4x64xf32>,
    %45 = vector.extract_strided_slice %6 {offsets = [0, 64], sizes = [256, 64], strides = [1, 1]} : vector<256x128xf32> to vector<256x64xf32>
    %46 = vector.extract_strided_slice %14 {offsets = [0, 4], sizes = [256, 4], strides = [1, 1]} : vector<256x8xf32> to vector<256x4xf32>
    %47 = vector.extract_strided_slice %46 {offsets = [0, 0], sizes = [64, 4], strides = [1, 1]} : vector<256x4xf32> to vector<64x4xf32>
    %48 = tpu.transpose %47, [1, 0] : vector<64x4xf32> -> vector<4x64xf32>
    %49 = vector.extract_strided_slice %45 {offsets = [0, 0], sizes = [64, 64], strides = [1, 1]} : vector<256x64xf32> to vector<64x64xf32>
    %cst_26 = arith.constant dense<0.000000e+00> : vector<4x64xf32>
    %50 = tpu.matmul %48, %49, %cst_26 {dimension_numbers = #tpu.dot_dimension_numbers<[1], [0], [0], [1], [0, 0, 1, 1], [], []>} : vector<4x64xf32>, vector<64x64xf32>, vector<4x64xf32> -> vector<4x64xf32>
    %c0_27 = arith.constant 0 : index
    %c4 = arith.constant 4 : index
    %c0_28 = arith.constant 0 : index
    %51 = vector.load %arg7[%c0_27, %c4, %c0_28] : memref<4x8x64xf32, #tpu.memory_space<vmem>>, vector<1x4x64xf32>
    %52 = vector.shape_cast %51 : vector<1x4x64xf32> to vector<4x64xf32>
    %53 = vector.shape_cast %50 : vector<4x64xf32> to vector<1x4x64xf32>
    tpu.vector_store %arg7[%c0_27, %c4, %c0_28], %53 {strides = array<i32>} : memref<4x8x64xf32, #tpu.memory_space<vmem>>, vector<1x4x64xf32>,
    %54 = vector.extract_strided_slice %46 {offsets = [64, 0], sizes = [64, 4], strides = [1, 1]} : vector<256x4xf32> to vector<64x4xf32>
    %55 = tpu.transpose %54, [1, 0] : vector<64x4xf32> -> vector<4x64xf32>
    %56 = vector.extract_strided_slice %45 {offsets = [64, 0], sizes = [64, 64], strides = [1, 1]} : vector<256x64xf32> to vector<64x64xf32>
    %cst_29 = arith.constant dense<0.000000e+00> : vector<4x64xf32>
    %57 = tpu.matmul %55, %56, %cst_29 {dimension_numbers = #tpu.dot_dimension_numbers<[1], [0], [0], [1], [0, 0, 1, 1], [], []>} : vector<4x64xf32>, vector<64x64xf32>, vector<4x64xf32> -> vector<4x64xf32>
    %c1_30 = arith.constant 1 : index
    %c4_31 = arith.constant 4 : index
    %c0_32 = arith.constant 0 : index
    %58 = vector.load %arg7[%c1_30, %c4_31, %c0_32] : memref<4x8x64xf32, #tpu.memory_space<vmem>>, vector<1x4x64xf32>
    %59 = vector.shape_cast %58 : vector<1x4x64xf32> to vector<4x64xf32>
    %60 = vector.shape_cast %57 : vector<4x64xf32> to vector<1x4x64xf32>
    tpu.vector_store %arg7[%c1_30, %c4_31, %c0_32], %60 {strides = array<i32>} : memref<4x8x64xf32, #tpu.memory_space<vmem>>, vector<1x4x64xf32>,
    %61 = vector.extract_strided_slice %46 {offsets = [128, 0], sizes = [64, 4], strides = [1, 1]} : vector<256x4xf32> to vector<64x4xf32>
    %62 = tpu.transpose %61, [1, 0] : vector<64x4xf32> -> vector<4x64xf32>
    %63 = vector.extract_strided_slice %45 {offsets = [128, 0], sizes = [64, 64], strides = [1, 1]} : vector<256x64xf32> to vector<64x64xf32>
    %cst_33 = arith.constant dense<0.000000e+00> : vector<4x64xf32>
    %64 = tpu.matmul %62, %63, %cst_33 {dimension_numbers = #tpu.dot_dimension_numbers<[1], [0], [0], [1], [0, 0, 1, 1], [], []>} : vector<4x64xf32>, vector<64x64xf32>, vector<4x64xf32> -> vector<4x64xf32>
    %c2_34 = arith.constant 2 : index
    %c4_35 = arith.constant 4 : index
    %c0_36 = arith.constant 0 : index
    %65 = vector.load %arg7[%c2_34, %c4_35, %c0_36] : memref<4x8x64xf32, #tpu.memory_space<vmem>>, vector<1x4x64xf32>
    %66 = vector.shape_cast %65 : vector<1x4x64xf32> to vector<4x64xf32>
    %67 = vector.shape_cast %64 : vector<4x64xf32> to vector<1x4x64xf32>
    tpu.vector_store %arg7[%c2_34, %c4_35, %c0_36], %67 {strides = array<i32>} : memref<4x8x64xf32, #tpu.memory_space<vmem>>, vector<1x4x64xf32>,
    %68 = vector.extract_strided_slice %46 {offsets = [192, 0], sizes = [64, 4], strides = [1, 1]} : vector<256x4xf32> to vector<64x4xf32>
    %69 = tpu.transpose %68, [1, 0] : vector<64x4xf32> -> vector<4x64xf32>
    %70 = vector.extract_strided_slice %45 {offsets = [192, 0], sizes = [64, 64], strides = [1, 1]} : vector<256x64xf32> to vector<64x64xf32>
    %cst_37 = arith.constant dense<0.000000e+00> : vector<4x64xf32>
    %71 = tpu.matmul %69, %70, %cst_37 {dimension_numbers = #tpu.dot_dimension_numbers<[1], [0], [0], [1], [0, 0, 1, 1], [], []>} : vector<4x64xf32>, vector<64x64xf32>, vector<4x64xf32> -> vector<4x64xf32>
    %c3_38 = arith.constant 3 : index
    %c4_39 = arith.constant 4 : index
    %c0_40 = arith.constant 0 : index
    %72 = vector.load %arg7[%c3_38, %c4_39, %c0_40] : memref<4x8x64xf32, #tpu.memory_space<vmem>>, vector<1x4x64xf32>
    %73 = vector.shape_cast %72 : vector<1x4x64xf32> to vector<4x64xf32>
    %74 = vector.shape_cast %71 : vector<4x64xf32> to vector<1x4x64xf32>
    tpu.vector_store %arg7[%c3_38, %c4_39, %c0_40], %74 {strides = array<i32>} : memref<4x8x64xf32, #tpu.memory_space<vmem>>, vector<1x4x64xf32>,
    return
  }
  func.func @transform_0(%arg0: i32) -> (i32, i32, i32) {
    %c0_i32 = arith.constant 0 : i32
    %c0_i32_0 = arith.constant 0 : i32
    %c0_i32_1 = arith.constant 0 : i32
    return %arg0, %c0_i32, %c0_i32_0 : i32, i32, i32
  }
  func.func @transform_1(%arg0: i32) -> (i32, i32) {
    %c0_i32 = arith.constant 0 : i32
    %c0_i32_0 = arith.constant 0 : i32
    %c0_i32_1 = arith.constant 0 : i32
    return %c0_i32, %c0_i32_0 : i32, i32
  }
  func.func @transform_2(%arg0: i32) -> (i32, i32) {
    %c0_i32 = arith.constant 0 : i32
    %c0_i32_0 = arith.constant 0 : i32
    %c0_i32_1 = arith.constant 0 : i32
    return %c0_i32, %c0_i32_0 : i32, i32
  }
  func.func @transform_3(%arg0: i32) -> (i32, i32) {
    %c0_i32 = arith.constant 0 : i32
    %c0_i32_0 = arith.constant 0 : i32
    %c0_i32_1 = arith.constant 0 : i32
    return %c0_i32, %c0_i32_0 : i32, i32
  }
  func.func @transform_4(%arg0: i32) -> (i32, i32) {
    %c0_i32 = arith.constant 0 : i32
    %c0_i32_0 = arith.constant 0 : i32
    %c0_i32_1 = arith.constant 0 : i32
    return %c0_i32, %c0_i32_0 : i32, i32
  }
  func.func @transform_5(%arg0: i32) -> (i32, i32) {
    %c0_i32 = arith.constant 0 : i32
    %c0_i32_0 = arith.constant 0 : i32
    return %arg0, %c0_i32 : i32, i32
  }
  func.func @transform_6(%arg0: i32) -> (i32, i32, i32) {
    %c0_i32 = arith.constant 0 : i32
    %c0_i32_0 = arith.constant 0 : i32
    %c0_i32_1 = arith.constant 0 : i32
    return %arg0, %c0_i32, %c0_i32_0 : i32, i32, i32
  }
}

</mosaic_0001>

<bundles_post_ra>
// kernel: tpu_custom_call.1
= control target key start
LH: loop header
LB: loop body
LE: loop exit
PB: predicated region body
PF: predicated region fallthrough
CT: control target
= control target key end

     0   :  { %11 = vsyncpa [#allocation3], 0  ;;  %s4045_s0 = inlined_call_operand.vmem [shape: f32[8,64,32], index: 0, kind: input, shape index: {}]   ;;  %s4046_s1 = inlined_call_operand.vmem [shape: f32[32,128], index: 1, kind: input, shape index: {}]   ;;  %s4047_s2 = inlined_call_operand.vmem [shape: f32[1,128], index: 2, kind: input, shape index: {}]   ;;  %s4048_s3 = inlined_call_operand.vmem [shape: f32[32,8], index: 3, kind: input, shape index: {}]   ;;  %s4049_s4 = inlined_call_operand.vmem [shape: f32[1,8], index: 4, kind: input, shape index: {}]   ;;  %s4050_s5 = inlined_call_operand.vmem [shape: f32[512,1], index: 5, kind: input, shape index: {}]   ;;  %s4051_s6 = inlined_call_operand.hbm [shape: f32[8,8,64], index: 6, kind: output, shape index: {}]  }
   0x1   :  { %13 = vsyncpa [#allocation3 + $0x1], 0  ;;  %s3154_s21 = smov 0   ;;  %s3156_s22 = smov 0  }
   0x2   :  { %s3158_s23 = smov 0   ;;  %s3160_s24 = smov 0  }
   0x3 LB: > { %s3175_s25 = sadd.s32 4294967295, %s3108_s24   ;;  %s2300_s26 = sadd.s32 4294967294, %s3108_s24   ;;  %s3108_s24 = sphi %s3160_s24, %s4067_s24   ;;  %s3104_s23 = sphi %s3158_s23, %s4066_s23   ;;  %s3100_s22 = sphi %s3156_s22, %s4065_s22   ;;  %s3096_s21 = sphi %s3154_s21, %s4064_s21  }
   0x4   : > { %s3179_s27 = sadd.s32 1, %s3108_s24   ;;  %s162_s28 = sadd.s32 1, %s3104_s23 }
   0x5   : > { %s159_s29 = ssub.s32 %s3108_s24, %s3179_s27  ;;  %p172_p0 = scmp.ne.s32.totalorder %s3104_s23, %s3100_s22 }
   0x6   : > { %p160_p1 = scmp.eq.s32.totalorder %s159_s29, 0  ;;  %p173_p2 = scmp.eq.s32.totalorder %s3175_s25, 1 }
   0x7   : > { %p178_p3 = scmp.ne.s32.totalorder %s3100_s22, %s3096_s21  ;;  %p179_p4 = scmp.eq.s32.totalorder %s2300_s26, 1 }
   0x8   : > { %s3190_s30 = scalar_select %p160_p1, %s3104_s23, %s162_s28  }
   0x9   : > { %p3192_p5 = por %p173_p2, %p172_p0  ;;  %p3196_p6 = por %p179_p4, %p178_p3 }
   0xa   : > { %p2303_p7 = scmp.ge.s32.totalorder %s3108_s24, 1  ;;  %p228_p8 = scmp.lt.s32.totalorder %s3108_s24, 3 }
   0xc   : > { %p229_p9 = pnand %p2303_p7, %p228_p8 }
   0xd   : > { %v310_v0 = vld [vmem:[%s4046_s1] sm:$0xff] (!%p229_p9)  ;;  %v311_v1 = vld [vmem:[%s4046_s1 + $0x8] sm:$0xff] (!%p229_p9)  ;;  %s2305_s15 = sshll.u32 (!%p229_p9), %s3175_s25, 2  ;;  %v312_v5 = vld [vmem:[%s4046_s1 + $0x10] sm:$0xff] (!%p229_p9)  ;;  %v3110_v7 = vmov (!%p229_p9), 0   ;;  %s2308_s28 = sshll.u32 (!%p229_p9), %s3175_s25, 5 }
   0xe   : > { %232 = sbr.rel (%p229_p9) target bundleno = 907 (0x38b), region = 44  ;;  %v643_v2 = vld [vmem:[%s4048_s3] sm:$0xff] (!%p229_p9)  ;;  %v2805_v3 = vpack.c.bf16 (!%p229_p9), %v311_v1, %v310_v0  ;;  %v644_v4 = vld [vmem:[%s4048_s3 + $0x8] sm:$0xff] (!%p229_p9)  ;;  %v313_v6 = vld [vmem:[%s4046_s1 + $0x18] sm:$0xff] (!%p229_p9)  ;;  %p265_p10 = scmp.lt.s32.totalorder (!%p229_p9), %s2305_s15, 7  ;;  %2965 = vset.pattern.permute.xlu1 (!%p229_p9), %v3110_v7  ;;  %2964 = vset.pattern.permute.xlu0 (!%p229_p9), %v3110_v7  ;;  %vm321_vm0 = vcmask (!%p229_p9), 261120  }
   0xf   : > { %v2813_v8 = vpack.c.bf16 (!%p229_p9), %v644_v4, %v643_v2  ;;  %v2809_v9 = vpack.c.bf16 (!%p229_p9), %v313_v6, %v312_v5  ;;  %v645_v10 = vld [vmem:[%s4048_s3 + $0x10] sm:$0xff] (!%p229_p9)  ;;  %v646_v11 = vld [vmem:[%s4048_s3 + $0x18] sm:$0xff] (!%p229_p9)  ;;  %p272_p11 = scmp.lt.s32.totalorder (!%p229_p9), %s2308_s28, 63  ;;  %s3112_s9 = smov (!%p229_p9), 64   ;;  %vm3114_vm1 = vmmov (!%p229_p9), 0   ;;  %vm1135_vm2 = vcmask (!%p229_p9), 523264  }
  0x10   : > { %2806 = vmatprep.subr.bf16.mxu0 (!%p229_p9), %v2805_v3  ;;  %v2817_v12 = vpack.c.bf16 (!%p229_p9), %v646_v11, %v645_v10  ;;  %s3113_s10 = smov (!%p229_p9), 124   ;;  %s261_s11 = sand.u32 (!%p229_p9), 1, %s3100_s22   ;;  %vm1209_vm3 = vcmask (!%p229_p9), 519168  }
  0x11   : > { %2814 = vmatprep.subr.bf16.mxu1 (!%p229_p9), %v2813_v8  ;;  %2808 = vmatpush3.bf16.msra.mxu0 (!%p229_p9), %v2805_v3  ;;  %s2396_s14 = sshll.u32 (!%p229_p9), %s3175_s25, 9  ;;  %s3116_s25 = smov (!%p229_p9), [#allocation2]  }
  0x12   : > { %2816 = vmatpush3.bf16.msra.mxu1 (!%p229_p9), %v2813_v8  ;;  %2810 = vmatprep.subr.bf16.mxu0 (!%p229_p9), %v2809_v9  ;;  %s3997_s18 = scalar_lea.hbm (!%p229_p9), %s4051_s6, %s2396_s14  ;;  %s3050_s26 = sshll.u32 (!%p229_p9), %s3116_s25, 4  ;;  %s3051_s26 = int_to_ptr.vmem [resolvable:$false] %s3050_s26 }
  0x13   : > { %2818 = vmatprep.subr.bf16.mxu1 (!%p229_p9), %v2817_v12 }
  0x15   : > { %s4069_s15 = smov (!%p265_p10, %s2305_s15), 7  ;;  %s4071_s28 = smov (!%p272_p11, %s2308_s28), 63  ;;  %2812 = vmatpush3.bf16.msra.mxu0 %v2809_v9 }
  0x16   : > { %s2395_s12 = sshll.u32 %s4069_s15, 6  ;;  %s2309_s17 = sshll.u32 %s4071_s28, 3  ;;  %2820 = vmatpush3.bf16.msra.mxu1 %v2817_v12 }
  0x17   : > { %s3231_s16 = scalar_lea.vmem %s4045_s0, %s2395_s12  ;;  %s3241_s19 = scalar_lea.vmem %s4050_s5, %s2309_s17 }
  0x18   : > { %v278_v13 = vld [vmem:[%s3231_s16] sm:$0xff]  ;;  %v279_v14 = vld [vmem:[%s3231_s16 + $0x8] sm:$0xff]  ;;  %v280_v15 = vld [vmem:[%s3231_s16 + $0x10] sm:$0xff]  ;;  %s2304_s12 = sshll.u32 %s261_s11, 5  ;;  %s3052_s28 = scalar_lea.vmem %s3051_s26, 1024 }
  0x19   : > { %2549 = vmatprep.mubr.msk.f32.mxu0 %vm321_vm0, %v278_v13  ;;  %2605 = vmatprep.mubr.msk.f32.mxu1 %vm321_vm0, %v278_v13  ;;  %v281_v16 = vld [vmem:[%s3231_s16 + $0x18] sm:$0xff]  ;;  %v881_v17 = vld [vmem:[%s3241_s19 + $0x10] sm:$0xff]  ;;  %v282_v18 = vld [vmem:[%s3231_s16 + $0x20] sm:$0xff]  ;;  %v4052_v13 = vmov 0.0|0.0   ;;  %s263_s13 = scalar_lea.vmem [#allocation2], %s2304_s12 }
  0x1a   : > { %2550 = vmatmul.mubr.msk.f32.vlgmr.msra.gmra.mrb[0].mxu0 %vm321_vm0, %v279_v14  ;;  %2606 = vmatmul.mubr.msk.f32.vlgmr.msra.gmra.mrb[0].mxu1 %vm321_vm0, %v279_v14  ;;  %v879_v19 = vld [vmem:[%s3241_s19] sm:$0xff]  ;;  %v882_v20 = vld [vmem:[%s3241_s19 + $0x18] sm:$0xff]  ;;  %v880_v21 = vld [vmem:[%s3241_s19 + $0x8] sm:$0xff] }
  0x1b   : > { %2552 = vmatprep.mubr.msk.f32.mxu0 %vm321_vm0, %v280_v15  ;;  %2608 = vmatprep.mubr.msk.f32.mxu1 %vm321_vm0, %v280_v15  ;;  %v283_v22 = vld [vmem:[%s3231_s16 + $0x28] sm:$0xff]  ;;  %v284_v23 = vld [vmem:[%s3231_s16 + $0x30] sm:$0xff]  ;;  %v883_v25 = vld [vmem:[%s3241_s19 + $0x20] sm:$0xff] }
  0x1c   : > { %923 = vperm.xlu1 %2965, %v881_v17   ;;  %913 = vperm.xlu0 %2964, %v879_v19   ;;  %v884_v24 = vld [vmem:[%s3241_s19 + $0x28] sm:$0xff]  ;;  %v285_v26 = vld [vmem:[%s3231_s16 + $0x38] sm:$0xff]  ;;  %v286_v27 = vld [vmem:[%s3231_s16 + $0x40] sm:$0xff] }
  0x1d   : > { %v886_v28 = vld [vmem:[%s3241_s19 + $0x38] sm:$0xff]  ;;  %v885_v29 = vld [vmem:[%s3241_s19 + $0x30] sm:$0xff]  ;;  %v287_v30 = vld [vmem:[%s3231_s16 + $0x48] sm:$0xff]  ;;  %2821 = vmatprep.subr.bf16.mxu0 %v4052_v13  ;;  %2833 = vmatprep.subr.bf16.mxu1 %v4052_v13 }
  0x1e   : > { %2553 = vmatmul.mubr.msk.f32.gmra.mrb[2].mxu0 %vm321_vm0, %v281_v16  ;;  %2609 = vmatmul.mubr.msk.f32.gmra.mrb[2].mxu1 %vm321_vm0, %v281_v16  ;;  %v288_v31 = vld [vmem:[%s3231_s16 + $0x50] sm:$0xff]  ;;  %v888_v32 = vld [vmem:[%s3241_s19 + $0x48] sm:$0xff]  ;;  %v887_v33 = vld [vmem:[%s3241_s19 + $0x40] sm:$0xff] }
  0x1f   : > { %2555 = vmatprep.mubr.msk.f32.mxu0 %vm321_vm0, %v282_v18  ;;  %2611 = vmatprep.mubr.msk.f32.mxu1 %vm321_vm0, %v282_v18  ;;  %v289_v34 = vld [vmem:[%s3231_s16 + $0x58] sm:$0xff]  ;;  %v290_v35 = vld [vmem:[%s3231_s16 + $0x60] sm:$0xff]  ;;  %v889_v37 = vld [vmem:[%s3241_s19 + $0x50] sm:$0xff] }
  0x20   : > { %928 = vperm.xlu1 %2965, %v882_v20   ;;  %918 = vperm.xlu0 %2964, %v880_v21   ;;  %v890_v36 = vld [vmem:[%s3241_s19 + $0x58] sm:$0xff]  ;;  %v291_v38 = vld [vmem:[%s3231_s16 + $0x68] sm:$0xff]  ;;  %v292_v39 = vld [vmem:[%s3231_s16 + $0x70] sm:$0xff] }
  0x21   : > { %v892_v40 = vld [vmem:[%s3241_s19 + $0x68] sm:$0xff]  ;;  %v891_v41 = vld [vmem:[%s3241_s19 + $0x60] sm:$0xff]  ;;  %v293_v42 = vld [vmem:[%s3231_s16 + $0x78] sm:$0xff] }
  0x22   : > { %2556 = vmatmul.mubr.msk.f32.gmra.mrb[4].mxu0 %vm321_vm0, %v283_v22  ;;  %2612 = vmatmul.mubr.msk.f32.gmra.mrb[4].mxu1 %vm321_vm0, %v283_v22  ;;  %v294_v43 = vld [vmem:[%s3231_s16 + $0x80] sm:$0xff]  ;;  %v894_v44 = vld [vmem:[%s3241_s19 + $0x78] sm:$0xff]  ;;  %v893_v45 = vld [vmem:[%s3241_s19 + $0x70] sm:$0xff] }
  0x23   : > { %2558 = vmatprep.mubr.msk.f32.mxu0 %vm321_vm0, %v284_v23  ;;  %2614 = vmatprep.mubr.msk.f32.mxu1 %vm321_vm0, %v284_v23  ;;  %v295_v46 = vld [vmem:[%s3231_s16 + $0x88] sm:$0xff]  ;;  %v296_v47 = vld [vmem:[%s3231_s16 + $0x90] sm:$0xff]  ;;  %v895_v49 = vld [vmem:[%s3241_s19 + $0x80] sm:$0xff] }
  0x24   : > { %938 = vperm.xlu1 %2965, %v884_v24   ;;  %933 = vperm.xlu0 %2964, %v883_v25   ;;  %v896_v48 = vld [vmem:[%s3241_s19 + $0x88] sm:$0xff]  ;;  %v297_v50 = vld [vmem:[%s3231_s16 + $0x98] sm:$0xff]  ;;  %v298_v51 = vld [vmem:[%s3231_s16 + $0xa0] sm:$0xff] }
  0x25   : > { %v898_v52 = vld [vmem:[%s3241_s19 + $0x98] sm:$0xff]  ;;  %v897_v53 = vld [vmem:[%s3241_s19 + $0x90] sm:$0xff]  ;;  %v299_v54 = vld [vmem:[%s3231_s16 + $0xa8] sm:$0xff] }
  0x26   : > { %2559 = vmatmul.mubr.msk.f32.gmra.mrb[6].mxu0 %vm321_vm0, %v285_v26  ;;  %2615 = vmatmul.mubr.msk.f32.gmra.mrb[6].mxu1 %vm321_vm0, %v285_v26  ;;  %v300_v55 = vld [vmem:[%s3231_s16 + $0xb0] sm:$0xff]  ;;  %v900_v56 = vld [vmem:[%s3241_s19 + $0xa8] sm:$0xff]  ;;  %v899_v57 = vld [vmem:[%s3241_s19 + $0xa0] sm:$0xff] }
  0x27   : > { %2561 = vmatprep.mubr.msk.f32.mxu0 %vm321_vm0, %v286_v27  ;;  %2617 = vmatprep.mubr.msk.f32.mxu1 %vm321_vm0, %v286_v27  ;;  %v301_v58 = vld [vmem:[%s3231_s16 + $0xb8] sm:$0xff]  ;;  %v302_v59 = vld [vmem:[%s3231_s16 + $0xc0] sm:$0xff]  ;;  %v901_v61 = vld [vmem:[%s3241_s19 + $0xb0] sm:$0xff] }
  0x28   : > { %948 = vperm.xlu1 %2965, %v886_v28   ;;  %943 = vperm.xlu0 %2964, %v885_v29   ;;  %v902_v60 = vld [vmem:[%s3241_s19 + $0xb8] sm:$0xff]  ;;  %v303_v62 = vld [vmem:[%s3231_s16 + $0xc8] sm:$0xff]  ;;  %v304_v63 = vld [vmem:[%s3231_s16 + $0xd0] sm:$0xff] }
  0x29   : > { %v904_v0 = vld [vmem:[%s3241_s19 + $0xc8] sm:$0xff]  ;;  %v903_v1 = vld [vmem:[%s3241_s19 + $0xc0] sm:$0xff]  ;;  %v305_v2 = vld [vmem:[%s3231_s16 + $0xd8] sm:$0xff] }
  0x2a   : > { %2562 = vmatmul.mubr.msk.f32.gmra.mrb[8].mxu0 %vm321_vm0, %v287_v30  ;;  %2618 = vmatmul.mubr.msk.f32.gmra.mrb[8].mxu1 %vm321_vm0, %v287_v30  ;;  %v306_v3 = vld [vmem:[%s3231_s16 + $0xe0] sm:$0xff]  ;;  %v906_v4 = vld [vmem:[%s3241_s19 + $0xd8] sm:$0xff]  ;;  %v905_v5 = vld [vmem:[%s3241_s19 + $0xd0] sm:$0xff] }
  0x2b   : > { %2564 = vmatprep.mubr.msk.f32.mxu0 %vm321_vm0, %v288_v31  ;;  %2620 = vmatprep.mubr.msk.f32.mxu1 %vm321_vm0, %v288_v31  ;;  %v307_v6 = vld [vmem:[%s3231_s16 + $0xe8] sm:$0xff]  ;;  %v308_v7 = vld [vmem:[%s3231_s16 + $0xf0] sm:$0xff]  ;;  %v907_v9 = vld [vmem:[%s3241_s19 + $0xe0] sm:$0xff] }
  0x2c   : > { %958 = vperm.xlu1 %2965, %v888_v32   ;;  %953 = vperm.xlu0 %2964, %v887_v33   ;;  %v908_v8 = vld [vmem:[%s3241_s19 + $0xe8] sm:$0xff]  ;;  %v309_v10 = vld [vmem:[%s3231_s16 + $0xf8] sm:$0xff]  ;;  %v909_v12 = vld [vmem:[%s3241_s19 + $0xf0] sm:$0xff]  ;;  %s2226_s16 = sshll.u32 %s263_s13, 4  ;;  %s3999_s16 = int_to_ptr.vmem [resolvable:$true] %s2226_s16 }
  0x2d   : > { %v910_v11 = vld [vmem:[%s3241_s19 + $0xf8] sm:$0xff]  ;;  %v3373_v16 = vld [vmem:[%s4047_s2] ss:$0 sm:$0xff]  ;;  %s4004_s19 = scalar_lea.sflag [#allocation3], %s261_s11  ;;  %s3046_s20 = scalar_lea.vmem %s3999_s16, 512 }
  0x2e   : > { %2565 = vmatmul.mubr.msk.f32.gmra.mrb[10].mxu0 %vm321_vm0, %v289_v34  ;;  %2621 = vmatmul.mubr.msk.f32.gmra.mrb[10].mxu1 %vm321_vm0, %v289_v34  ;;  %v3378_v17 = vld [vmem:[%s4049_s4] ss:$0 sm:$0xff]  ;;  %p3047_p12 = scmp.ne.s32.totalorder %s3999_s16, %s3046_s20  ;;  %p3053_p1 = scmp.lt.s32.totalorder %s3999_s16, %s3051_s26 }
  0x2f   : > { %2567 = vmatprep.mubr.msk.f32.mxu0 %vm321_vm0, %v290_v35  ;;  %2623 = vmatprep.mubr.msk.f32.mxu1 %vm321_vm0, %v290_v35  ;;  %p3054_p2 = scmp.lt.s32.totalorder %s3052_s28, %s3046_s20 }
  0x30   : > { %968 = vperm.xlu1 %2965, %v890_v36   ;;  %963 = vperm.xlu0 %2964, %v889_v37   ;;  %p3048_p13 = pnand %p3047_p12, %p3192_p5 }
  0x31   : > { %p3055_p3 = por %p3054_p2, %p3053_p1 }
  0x32   : > { %2568 = vmatmul.mubr.msk.f32.gmra.mrb[12].mxu0 %vm321_vm0, %v291_v38  ;;  %2624 = vmatmul.mubr.msk.f32.gmra.mrb[12].mxu1 %vm321_vm0, %v291_v38  ;;  %p3049_p0 = pneg %p3048_p13 }
  0x33   : > { %2570 = vmatprep.mubr.msk.f32.mxu0 %vm321_vm0, %v292_v39  ;;  %2626 = vmatprep.mubr.msk.f32.mxu1 %vm321_vm0, %v292_v39 }
  0x34   : > { %978 = vperm.xlu1 %2965, %v892_v40   ;;  %973 = vperm.xlu0 %2964, %v891_v41   ;;  %p3056_p4 = pnand %p3055_p3, %p3049_p0 }
  0x36   : > { %2571 = vmatmul.mubr.msk.f32.gmra.mrb[14].mxu0 %vm321_vm0, %v293_v42  ;;  %2627 = vmatmul.mubr.msk.f32.gmra.mrb[14].mxu1 %vm321_vm0, %v293_v42 }
  0x37   : > { %2573 = vmatprep.mubr.msk.f32.mxu0 %vm321_vm0, %v294_v43  ;;  %2629 = vmatprep.mubr.msk.f32.mxu1 %vm321_vm0, %v294_v43 }
  0x38   : > { %988 = vperm.xlu1 %2965, %v894_v44   ;;  %983 = vperm.xlu0 %2964, %v893_v45  }
  0x3a   : > { %2574 = vmatmul.mubr.msk.f32.gmra.mrb[16].mxu0 %vm321_vm0, %v295_v46  ;;  %2630 = vmatmul.mubr.msk.f32.gmra.mrb[16].mxu1 %vm321_vm0, %v295_v46 }
  0x3b   : > { %2576 = vmatprep.mubr.msk.f32.mxu0 %vm321_vm0, %v296_v47  ;;  %2632 = vmatprep.mubr.msk.f32.mxu1 %vm321_vm0, %v296_v47 }
  0x3c   : > { %998 = vperm.xlu1 %2965, %v896_v48   ;;  %993 = vperm.xlu0 %2964, %v895_v49  }
  0x3e   : > { %2577 = vmatmul.mubr.msk.f32.gmra.mrb[18].mxu0 %vm321_vm0, %v297_v50  ;;  %2633 = vmatmul.mubr.msk.f32.gmra.mrb[18].mxu1 %vm321_vm0, %v297_v50 }
  0x3f   : > { %2579 = vmatprep.mubr.msk.f32.mxu0 %vm321_vm0, %v298_v51  ;;  %2635 = vmatprep.mubr.msk.f32.mxu1 %vm321_vm0, %v298_v51 }
  0x40   : > { %1008 = vperm.xlu1 %2965, %v898_v52   ;;  %1003 = vperm.xlu0 %2964, %v897_v53  }
  0x42   : > { %2580 = vmatmul.mubr.msk.f32.gmra.mrb[20].mxu0 %vm321_vm0, %v299_v54  ;;  %2636 = vmatmul.mubr.msk.f32.gmra.mrb[20].mxu1 %vm321_vm0, %v299_v54 }
  0x43   : > { %2582 = vmatprep.mubr.msk.f32.mxu0 %vm321_vm0, %v300_v55  ;;  %2638 = vmatprep.mubr.msk.f32.mxu1 %vm321_vm0, %v300_v55 }
  0x44   : > { %1018 = vperm.xlu1 %2965, %v900_v56   ;;  %1013 = vperm.xlu0 %2964, %v899_v57  }
  0x46   : > { %2583 = vmatmul.mubr.msk.f32.gmra.mrb[22].mxu0 %vm321_vm0, %v301_v58  ;;  %2639 = vmatmul.mubr.msk.f32.gmra.mrb[22].mxu1 %vm321_vm0, %v301_v58 }
  0x47   : > { %2585 = vmatprep.mubr.msk.f32.mxu0 %vm321_vm0, %v302_v59  ;;  %2641 = vmatprep.mubr.msk.f32.mxu1 %vm321_vm0, %v302_v59 }
  0x48   : > { %1028 = vperm.xlu1 %2965, %v902_v60   ;;  %1023 = vperm.xlu0 %2964, %v901_v61  }
  0x4a   : > { %2586 = vmatmul.mubr.msk.f32.gmra.mrb[24].mxu0 %vm321_vm0, %v303_v62  ;;  %2642 = vmatmul.mubr.msk.f32.gmra.mrb[24].mxu1 %vm321_vm0, %v303_v62 }
  0x4b   : > { %2588 = vmatprep.mubr.msk.f32.mxu0 %vm321_vm0, %v304_v63  ;;  %2644 = vmatprep.mubr.msk.f32.mxu1 %vm321_vm0, %v304_v63 }
  0x4c   : > { %1038 = vperm.xlu1 %2965, %v904_v0   ;;  %1033 = vperm.xlu0 %2964, %v903_v1  }
  0x4e   : > { %2589 = vmatmul.mubr.msk.f32.gmra.mrb[26].mxu0 %vm321_vm0, %v305_v2  ;;  %2645 = vmatmul.mubr.msk.f32.gmra.mrb[26].mxu1 %vm321_vm0, %v305_v2 }
  0x4f   : > { %2591 = vmatprep.mubr.msk.f32.mxu0 %vm321_vm0, %v306_v3  ;;  %2647 = vmatprep.mubr.msk.f32.mxu1 %vm321_vm0, %v306_v3 }
  0x50   : > { %1048 = vperm.xlu1 %2965, %v906_v4   ;;  %1043 = vperm.xlu0 %2964, %v905_v5  }
  0x52   : > { %2592 = vmatmul.mubr.msk.f32.gmra.mrb[28].mxu0 %vm321_vm0, %v307_v6  ;;  %2648 = vmatmul.mubr.msk.f32.gmra.mrb[28].mxu1 %vm321_vm0, %v307_v6 }
  0x53   : > { %2594 = vmatprep.mubr.msk.f32.mxu0 %vm321_vm0, %v308_v7  ;;  %2650 = vmatprep.mubr.msk.f32.mxu1 %vm321_vm0, %v308_v7 }
  0x54   : > { %1058 = vperm.xlu1 %2965, %v908_v8   ;;  %1053 = vperm.xlu0 %2964, %v907_v9  }
  0x56   : > { %2595 = vmatmul.mubr.msk.f32.gmra.mrb[30].mxu0 %vm321_vm0, %v309_v10  ;;  %2651 = vmatmul.mubr.msk.f32.gmra.mrb[30].mxu1 %vm321_vm0, %v309_v10 }
  0x58   : > { %1068 = vperm.xlu1 %2965, %v910_v11   ;;  %1063 = vperm.xlu0 %2964, %v909_v12  }
  0x9b   : > { %v3368_v14 = vpop.permute.xlu1 %923  ;;  %v914_v15 = vpop.permute.xlu0 %913 }
  0x9f   : > { %v929_v25 = vpop.permute.xlu1 %928  ;;  %v919_v26 = vpop.permute.xlu0 %918 }
  0xa3   : > { %v3395_v43 = vpop.permute.xlu1 %938  ;;  %v3416_v53 = vpop.permute.xlu0 %933 }
  0xa7   : > { %v3426_v56 = vpop.permute.xlu1 %948  ;;  %v3437_v2 = vpop.permute.xlu0 %943 }
  0xed   : > { %v2551_v18 = vpop.f32.mrb[0].mxu0  ;;  %v2607_v21 = vpop.f32.mrb[0].mxu1 }
  0xee   : > { %v490_v19 = vadd.f32 %v2551_v18, %v3373_v16  ;;  %v484_v20 = vpop.f32.mrb[1].mxu0  ;;  %v726_v23 = vadd.f32 %v2607_v21, %v3378_v17  ;;  %v720_v24 = vpop.f32.mrb[1].mxu1 }
  0xef   : > { %v485_v22 = vadd.f32 %v3373_v16, %v484_v20  ;;  %v721_v36 = vadd.f32 %v3378_v17, %v720_v24  ;;  %v959_v18 = vpop.permute.xlu1 %958 }
  0xf0   : > { %v3384_v33 = vmul.f32 %v919_v26, %v726_v23 }
  0xf1   : > { %v2966_v27 = vpack.i.bf16 %v490_v19, %v485_v22  ;;  %v2822_v28 = vpack.c.bf16 %v490_v19, %v485_v22  ;;  %v2554_v29 = vpop.f32.mrb[2].mxu0  ;;  %v2610_v31 = vpop.f32.mrb[2].mxu1  ;;  %v3405_v46 = vmul.f32 %v914_v15, %v721_v36 }
  0xf2   : > { %v500_v30 = vadd.f32 %v2554_v29, %v3373_v16  ;;  %v494_v32 = vpop.f32.mrb[3].mxu0  ;;  %v730_v35 = vpop.f32.mrb[3].mxu1  ;;  %v736_v60 = vadd.f32 %v2610_v31, %v3378_v17 }
  0xf3   : > { %v495_v34 = vadd.f32 %v3373_v16, %v494_v32  ;;  %2967 = vrot.lane.b32.xlu0 %v2966_v27, %s3112_s9  ;;  %2823 = vmatpush3.bf16.msra.mxu0 %v2822_v28  ;;  %v731_v8 = vadd.f32 %v3378_v17, %v730_v35 }
  0xf4   : > { %2824 = vmatprep.subr.bf16.mxu0 %v4052_v13  ;;  %v3440_v7 = vmul.f32 %v929_v25, %v736_v60 }
  0xf5   : > { %v2971_v37 = vpack.i.bf16 %v500_v30, %v495_v34  ;;  %v2825_v38 = vpack.c.bf16 %v500_v30, %v495_v34  ;;  %v2557_v39 = vpop.f32.mrb[4].mxu0  ;;  %v3393_v41 = vpop.f32.mrb[4].mxu1  ;;  %v3453_v24 = vmul.f32 %v3368_v14, %v731_v8 }
  0xf6   : > { %v3391_v40 = vadd.f32 %v2557_v39, %v3373_v16  ;;  %v504_v42 = vpop.f32.mrb[5].mxu0  ;;  %v3400_v45 = vpop.f32.mrb[5].mxu1  ;;  %v746_v35 = vadd.f32 %v3393_v41, %v3378_v17 }
  0xf7   : > { %v3398_v44 = vadd.f32 %v3373_v16, %v504_v42  ;;  %1542 = vrot.lane.b32.xlu0 %v3384_v33, %s3113_s10  ;;  %2826 = vmatpush3.bf16.msra.mxu0 %v2825_v38  ;;  %v954_v30 = vpop.permute.xlu0 %953 }
  0xf8   : > { %2827 = vmatprep.subr.bf16.mxu0 %v4052_v13 }
  0xf9   : > { %v2976_v47 = vpack.i.bf16 %v3391_v40, %v3398_v44  ;;  %v2828_v48 = vpack.c.bf16 %v3391_v40, %v3398_v44  ;;  %v2560_v49 = vpop.f32.mrb[6].mxu0  ;;  %v3414_v51 = vpop.f32.mrb[6].mxu1 }
  0xfa   : > { %v3412_v50 = vadd.f32 %v2560_v49, %v3373_v16  ;;  %v514_v52 = vpop.f32.mrb[7].mxu0  ;;  %v3421_v55 = vpop.f32.mrb[7].mxu1 }
  0xfb   : > { %v3419_v54 = vadd.f32 %v3373_v16, %v514_v52  ;;  %1540 = vrot.lane.b32.xlu0 %v3405_v46, %s3113_s10  ;;  %2829 = vmatpush3.bf16.msra.mxu0 %v2828_v48 }
  0xfc   : > { %2830 = vmatprep.subr.bf16.mxu0 %v4052_v13 }
  0xfd   : > { %v2981_v57 = vpack.i.bf16 %v3412_v50, %v3419_v54  ;;  %v2831_v58 = vpack.c.bf16 %v3412_v50, %v3419_v54  ;;  %v2563_v59 = vpop.f32.mrb[8].mxu0  ;;  %v2619_v62 = vpop.f32.mrb[8].mxu1 }
  0xfe   : > { %v530_v61 = vadd.f32 %v2563_v59, %v3373_v16  ;;  %v524_v63 = vpop.f32.mrb[9].mxu0  ;;  %v760_v1 = vpop.f32.mrb[9].mxu1  ;;  %v766_v3 = vadd.f32 %v2619_v62, %v3378_v17  ;;  %v741_v59 = vadd.f32 %v3378_v17, %v3400_v45 }
  0xff   : > { %v525_v0 = vadd.f32 %v3373_v16, %v524_v63  ;;  %2972 = vrot.lane.b32.xlu0 %v2971_v37, %s3112_s9  ;;  %2832 = vmatpush3.bf16.msra.mxu0 %v2831_v58  ;;  %v761_v20 = vadd.f32 %v3378_v17, %v760_v1  ;;  %v3501_v58 = vmul.f32 %v3395_v43, %v746_v35  ;;  %v969_v43 = vpop.permute.xlu1 %968 }
 0x100   : > { %2845 = vmatprep.subr.bf16.mxu0 %v4052_v13  ;;  %v3449_v19 = vmul.f32 %v959_v18, %v766_v3 }
 0x101   : > { %v2986_v4 = vpack.i.bf16 %v530_v61, %v525_v0  ;;  %v2834_v5 = vpack.c.bf16 %v530_v61, %v525_v0  ;;  %v2566_v6 = vpop.f32.mrb[10].mxu0  ;;  %v2622_v9 = vpop.f32.mrb[10].mxu1  ;;  %v3470_v14 = vmul.f32 %v954_v30, %v761_v20 }
 0x102   : > { %v540_v10 = vadd.f32 %v2566_v6, %v3373_v16  ;;  %v534_v11 = vpop.f32.mrb[11].mxu0  ;;  %v770_v12 = vpop.f32.mrb[11].mxu1  ;;  %v776_v41 = vadd.f32 %v2622_v9, %v3378_v17 }
 0x103   : > { %2987 = vrot.lane.b32.xlu1 %v2986_v4, %s3112_s9  ;;  %2835 = vmatpush3.bf16.msra.mxu1 %v2834_v5  ;;  %v535_v15 = vadd.f32 %v3373_v16, %v534_v11  ;;  %v771_v0 = vadd.f32 %v3378_v17, %v770_v12  ;;  %v3529_v5 = vmul.f32 %v3416_v53, %v741_v59 }
 0x104   : > { %1546 = vrot.lane.b32.xlu0 %v3440_v7, %s3113_s10  ;;  %2836 = vmatprep.subr.bf16.mxu1 %v4052_v13  ;;  %v3521_v45 = vmul.f32 %v969_v43, %v776_v41  ;;  %v979_v43 = vpop.permute.xlu1 %978 }
 0x105   : > { %v2991_v21 = vpack.i.bf16 %v540_v10, %v535_v15  ;;  %v2837_v22 = vpack.c.bf16 %v540_v10, %v535_v15  ;;  %v2569_v23 = vpop.f32.mrb[12].mxu0  ;;  %v3455_v25 = vpop.f32.mrb[12].mxu1 }
 0x106   : > { %v3458_v26 = vadd.f32 %v2569_v23, %v3373_v16  ;;  %v544_v27 = vpop.f32.mrb[13].mxu0  ;;  %v3460_v28 = vpop.f32.mrb[13].mxu1  ;;  %v756_v23 = vadd.f32 %v3414_v51, %v3378_v17  ;;  %v786_v51 = vadd.f32 %v3455_v25, %v3378_v17 }
 0x107   : > { %1712 = vrot.lane.b32.xlu1 %v3449_v19, %s3113_s10  ;;  %2838 = vmatpush3.bf16.msra.mxu1 %v2837_v22  ;;  %v3465_v29 = vadd.f32 %v3373_v16, %v544_v27  ;;  %v964_v15 = vpop.permute.xlu0 %963 }
 0x108   : > { %1544 = vrot.lane.b32.xlu0 %v3453_v24, %s3113_s10  ;;  %2839 = vmatprep.subr.bf16.mxu1 %v4052_v13  ;;  %v3547_v53 = vmul.f32 %v964_v15, %v771_v0  ;;  %v3602_v0 = vmul.f32 %v979_v43, %v786_v51 }
 0x109   : > { %v2996_v31 = vpack.i.bf16 %v3458_v26, %v3465_v29  ;;  %v2840_v32 = vpack.c.bf16 %v3458_v26, %v3465_v29  ;;  %v2572_v34 = vpop.f32.mrb[14].mxu0  ;;  %v3478_v36 = vpop.f32.mrb[14].mxu1 }
 0x10a   : > { %v3481_v37 = vadd.f32 %v2572_v34, %v3373_v16  ;;  %v554_v38 = vpop.f32.mrb[15].mxu0  ;;  %v3483_v39 = vpop.f32.mrb[15].mxu1 }
 0x10b   : > { %1710 = vrot.lane.b32.xlu1 %v3470_v14, %s3113_s10  ;;  %2841 = vmatpush3.bf16.msra.mxu1 %v2840_v32  ;;  %v3488_v42 = vadd.f32 %v3373_v16, %v554_v38  ;;  %v989_v26 = vpop.permute.xlu1 %988 }
 0x10c   : > { %2977 = vrot.lane.b32.xlu0 %v2976_v47, %s3112_s9  ;;  %2842 = vmatprep.subr.bf16.mxu1 %v4052_v13 }
 0x10d   : > { %v3001_v48 = vpack.i.bf16 %v3481_v37, %v3488_v42  ;;  %v2843_v49 = vpack.c.bf16 %v3481_v37, %v3488_v42  ;;  %v2575_v52 = vpop.f32.mrb[16].mxu0  ;;  %v2631_v60 = vpop.f32.mrb[16].mxu1 }
 0x10e   : > { %v3506_v40 = vadd.f32 %v2575_v52, %v3373_v16  ;;  %v564_v44 = vpop.f32.mrb[17].mxu0  ;;  %v3509_v47 = vadd.f32 %v2631_v60, %v3378_v17  ;;  %v800_v61 = vpop.f32.mrb[17].mxu1  ;;  %v3580_v60 = vmul.f32 %v3426_v56, %v756_v23 }
 0x10f   : > { %2992 = vrot.lane.b32.xlu1 %v2991_v21, %s3112_s9  ;;  %2844 = vmatpush3.bf16.msra.mxu1 %v2843_v49  ;;  %v3513_v62 = vadd.f32 %v3373_v16, %v564_v44  ;;  %v3516_v63 = vadd.f32 %v3378_v17, %v800_v61  ;;  %v751_v44 = vadd.f32 %v3378_v17, %v3421_v55 }
 0x110   : > { %1550 = vrot.lane.b32.xlu0 %v3501_v58, %s3113_s10  ;;  %2857 = vmatprep.subr.bf16.mxu1 %v4052_v13 }
 0x111   : > { %v3006_v1 = vpack.i.bf16 %v3506_v40, %v3513_v62  ;;  %v2578_v4 = vpop.f32.mrb[18].mxu0  ;;  %v2634_v6 = vpop.f32.mrb[18].mxu1 }
 0x112   : > { %v3532_v8 = vadd.f32 %v2578_v4, %v3373_v16  ;;  %v574_v9 = vpop.f32.mrb[19].mxu0  ;;  %v3535_v10 = vadd.f32 %v2634_v6, %v3378_v17  ;;  %v810_v11 = vpop.f32.mrb[19].mxu1  ;;  %v781_v4 = vadd.f32 %v3378_v17, %v3460_v28 }
 0x113   : > { %1716 = vrot.lane.b32.xlu1 %v3521_v45, %s3113_s10  ;;  %v3540_v12 = vadd.f32 %v3373_v16, %v574_v9  ;;  %v3543_v18 = vadd.f32 %v3378_v17, %v810_v11 }
 0x114   : > { %1548 = vrot.lane.b32.xlu0 %v3529_v5, %s3113_s10 }
 0x115   : > { %v3011_v20 = vpack.i.bf16 %v3532_v8, %v3540_v12  ;;  %v2581_v22 = vpop.f32.mrb[20].mxu0  ;;  %v2637_v27 = vpop.f32.mrb[20].mxu1 }
 0x116   : > { %v3556_v30 = vadd.f32 %v2581_v22, %v3373_v16  ;;  %v584_v32 = vpop.f32.mrb[21].mxu0  ;;  %v3559_v34 = vadd.f32 %v2637_v27, %v3378_v17  ;;  %v820_v35 = vpop.f32.mrb[21].mxu1 }
 0x117   : > { %1714 = vrot.lane.b32.xlu1 %v3547_v53, %s3113_s10  ;;  %v3564_v38 = vadd.f32 %v3373_v16, %v584_v32  ;;  %v3567_v41 = vadd.f32 %v3378_v17, %v820_v35  ;;  %v974_v27 = vpop.permute.xlu0 %973 }
 0x118   : > { %2982 = vrot.lane.b32.xlu0 %v2981_v57, %s3112_s9 }
 0x119   : > { %v3016_v49 = vpack.i.bf16 %v3556_v30, %v3564_v38  ;;  %v2584_v59 = vpop.f32.mrb[22].mxu0  ;;  %v2640_v61 = vpop.f32.mrb[22].mxu1 }
 0x11a   : > { %v3585_v50 = vadd.f32 %v2584_v59, %v3373_v16  ;;  %v594_v54 = vpop.f32.mrb[23].mxu0  ;;  %v3588_v57 = vadd.f32 %v2640_v61, %v3378_v17  ;;  %v830_v25 = vpop.f32.mrb[23].mxu1 }
 0x11b   : > { %2997 = vrot.lane.b32.xlu1 %v2996_v31, %s3112_s9  ;;  %v3595_v56 = vadd.f32 %v3373_v16, %v594_v54  ;;  %v3598_v55 = vadd.f32 %v3378_v17, %v830_v25  ;;  %v3611_v31 = vmul.f32 %v3437_v2, %v751_v44  ;;  %v3629_v2 = vmul.f32 %v974_v27, %v781_v4 }
 0x11c   : > { %1554 = vrot.lane.b32.xlu0 %v3580_v60, %s3113_s10 }
 0x11d   : > { %v3021_v6 = vpack.i.bf16 %v3585_v50, %v3595_v56  ;;  %v2587_v29 = vpop.f32.mrb[24].mxu0  ;;  %v2643_v9 = vpop.f32.mrb[24].mxu1 }
 0x11e   : > { %v3614_v11 = vadd.f32 %v2587_v29, %v3373_v16  ;;  %v604_v15 = vpop.f32.mrb[25].mxu0  ;;  %v3617_v22 = vadd.f32 %v2643_v9, %v3378_v17  ;;  %v840_v23 = vpop.f32.mrb[25].mxu1  ;;  %v796_v9 = vadd.f32 %v3478_v36, %v3378_v17 }
 0x11f   : > { %1720 = vrot.lane.b32.xlu1 %v3602_v0, %s3113_s10  ;;  %v3622_v28 = vadd.f32 %v3373_v16, %v604_v15  ;;  %v3625_v32 = vadd.f32 %v3378_v17, %v840_v23 }
 0x120   : > { %1552 = vrot.lane.b32.xlu0 %v3611_v31, %s3113_s10  ;;  %v1086_v52 = vmul.f32 %v989_v26, %v796_v9 }
 0x121   : > { %v3026_v35 = vpack.i.bf16 %v3614_v11, %v3622_v28  ;;  %v2590_v59 = vpop.f32.mrb[26].mxu0  ;;  %v2646_v44 = vpop.f32.mrb[26].mxu1 }
 0x122   : > { %v3636_v61 = vadd.f32 %v2590_v59, %v3373_v16  ;;  %v614_v54 = vpop.f32.mrb[27].mxu0  ;;  %v3639_v25 = vadd.f32 %v2646_v44, %v3378_v17  ;;  %v850_v43 = vpop.f32.mrb[27].mxu1 }
 0x123   : > { %1718 = vrot.lane.b32.xlu1 %v3629_v2, %s3113_s10  ;;  %v3644_v4 = vadd.f32 %v3373_v16, %v614_v54  ;;  %v3647_v29 = vadd.f32 %v3378_v17, %v850_v43 }
 0x125   : > { %v3031_v15 = vpack.i.bf16 %v3636_v61, %v3644_v4  ;;  %v2593_v27 = vpop.f32.mrb[28].mxu0  ;;  %v2649_v59 = vpop.f32.mrb[28].mxu1 }
 0x126   : > { %v3656_v44 = vadd.f32 %v2593_v27, %v3373_v16  ;;  %v624_v51 = vpop.f32.mrb[29].mxu0  ;;  %v3659_v54 = vadd.f32 %v2649_v59, %v3378_v17  ;;  %v860_v43 = vpop.f32.mrb[29].mxu1  ;;  %v791_v27 = vadd.f32 %v3378_v17, %v3483_v39 }
 0x127   : > { %3002 = vrot.lane.b32.xlu1 %v3001_v48, %s3112_s9  ;;  %v3666_v36 = vadd.f32 %v3373_v16, %v624_v51  ;;  %v3669_v23 = vadd.f32 %v3378_v17, %v860_v43  ;;  %v984_v48 = vpop.permute.xlu0 %983 }
 0x128   : > { %v1085_v26 = vmul.f32 %v984_v48, %v791_v27 }
 0x129   : > { %v3036_v59 = vpack.i.bf16 %v3656_v44, %v3666_v36  ;;  %v2652_v13 = vpop.f32.mrb[30].mxu1  ;;  %v2596_v39 = vpop.f32.mrb[30].mxu0 }
 0x12a   : > { %v3678_v37 = vadd.f32 %v2652_v13, %v3378_v17  ;;  %v870_v42 = vpop.f32.mrb[31].mxu1  ;;  %v3686_v9 = vadd.f32 %v2596_v39, %v3373_v16  ;;  %v634_v43 = vpop.f32.mrb[31].mxu0 }
 0x12b   : > { %1724 = vrot.lane.b32.xlu1 %v1086_v52, %s3113_s10  ;;  %v3682_v51 = vadd.f32 %v3378_v17, %v870_v42  ;;  %v3689_v21 = vadd.f32 %v3373_v16, %v634_v43  ;;  %v3115_v17 = vmov 0.0   ;;  %v994_v16 = vpop.permute.xlu0 %993 }
 0x12c   : > { %2669 = vmatprep.mubr.msk.f32.mxu0 %vm3114_vm1, %v3115_v17  ;;  %2688 = vmatprep.mubr.msk.f32.mxu1 %vm3114_vm1, %v3115_v17 }
 0x12d   : > { %v3041_v13 = vpack.i.bf16 %v3686_v9, %v3689_v21  ;;  %v2867_v3 = vpack.c.bf16 %v3686_v9, %v3689_v21 }
 0x12f   : > { %1722 = vrot.lane.b32.xlu1 %v1085_v26, %s3113_s10  ;;  %v1004_v27 = vpop.permute.xlu0 %1003 }
 0x133   : > { %v1014_v42 = vpop.permute.xlu0 %1013 }
 0x13e   : > { %1103 = vxpose.xlu0.b32.start [1/8] (short) (narrow) %v3405_v46, 8  ;;  %v3708_v46 = vpop.permute.xlu0 %1023 }
 0x142   : > { %1104 = vxpose.xlu0.b32.cont [2/8] (short) (narrow) %v3384_v33, 8  ;;  %v1034_v33 = vpop.permute.xlu0 %1033 }
 0x146   : > { %1105 = vxpose.xlu0.b32.cont [3/8] (short) (narrow) %v3453_v24, 8  ;;  %v1044_v24 = vpop.permute.xlu0 %1043 }
 0x14a   : > { %1106 = vxpose.xlu0.b32.cont [4/8] (short) (narrow) %v3440_v7, 8  ;;  %v999_v7 = vpop.permute.xlu1 %998 }
 0x14e   : > { %1107 = vxpose.xlu0.b32.cont [5/8] (short) (narrow) %v3529_v5, 8  ;;  %v1054_v5 = vpop.permute.xlu0 %1053 }
 0x152   : > { %1108 = vxpose.xlu0.b32.cont [6/8] (short) (narrow) %v3501_v58, 8  ;;  %v1009_v58 = vpop.permute.xlu1 %1008 }
 0x156   : > { %1109 = vxpose.xlu0.b32.cont [7/8] (short) (narrow) %v3611_v31, 8 }
 0x158   : > { %1211 = vxpose.xlu1.b32.start [1/8] (short) (narrow) %v3470_v14, 8  ;;  %v1019_v14 = vpop.permute.xlu1 %1018 }
 0x15a   : > { %1110 = vxpose.xlu0.b32.end [8/8] (short) (narrow) %v3580_v60, 8  ;;  %v3715_v60 = vpop.permute.xlu0 %1063 }
 0x15c   : > { %1212 = vxpose.xlu1.b32.cont [2/8] (short) (narrow) %v3449_v19, 8  ;;  %v1029_v31 = vpop.permute.xlu1 %1028 }
 0x160   : > { %1213 = vxpose.xlu1.b32.cont [3/8] (short) (narrow) %v3547_v53, 8  ;;  %v1039_v53 = vpop.permute.xlu1 %1038 }
 0x164   : > { %1214 = vxpose.xlu1.b32.cont [4/8] (short) (narrow) %v3521_v45, 8  ;;  %v1049_v39 = vpop.permute.xlu1 %1048 }
 0x165   : > { %v3717_v19 = vpop.permute.xlu0 %2967 }
 0x168   : > { %1215 = vxpose.xlu1.b32.cont [5/8] (short) (narrow) %v3629_v2, 8  ;;  %v3733_v2 = vmul.f32 %v994_v16, %v3516_v63  ;;  %v3757_v63 = vmul.f32 %v1039_v53, %v3617_v22  ;;  %v1092_v22 = vmul.f32 %v1019_v14, %v3559_v34  ;;  %v3796_v34 = vmul.f32 %v1044_v24, %v3647_v29 }
 0x169   : > { %v3719_v48 = vpop.permute.xlu0 %1542  ;;  %v4059_v53 = vpack.c.bf16 %v3556_v30, %v3564_v38  ;;  %v4061_v30 = vpack.c.bf16 %v3614_v11, %v3622_v28  ;;  %v4062_v38 = vpack.c.bf16 %v3636_v61, %v3644_v4 }
 0x16c   : > { %1216 = vxpose.xlu1.b32.cont [6/8] (short) (narrow) %v3602_v0, 8  ;;  %v3728_v0 = vmul.f32 %v999_v7, %v3509_v47 }
 0x16d   : > { %v3725_v45 = vpop.permute.xlu0 %1540 }
 0x170   : > { %1217 = vxpose.xlu1.b32.cont [7/8] (short) (narrow) %v1085_v26, 8 }
 0x171   : > { %v3735_v26 = vpop.permute.xlu0 %2972 }
 0x174   : > { %1218 = vxpose.xlu1.b32.end [8/8] (short) (narrow) %v1086_v52, 8  ;;  %v1059_v52 = vpop.permute.xlu1 %1058 }
 0x175   : > { %v1100_v29 = vmul.f32 %v1059_v52, %v3659_v54 }
 0x176   : > { %v3743_v47 = vpop.permute.xlu0 %1546 }
 0x178   : > { %v1069_v43 = vpop.permute.xlu1 %1068 }
 0x17a   : > { %v3760_v16 = vpop.permute.xlu0 %1544 }
 0x17c   : > { %v3748_v7 = vpop.permute.xlu1 %2987 }
 0x183   : > { %3007 = vrot.lane.b32.xlu0 %v3006_v1, %s3112_s9  ;;  %v3746_v1 = vmul.f32 %v1009_v58, %v3535_v10  ;;  %v3766_v10 = vmul.f32 %v1034_v33, %v3625_v32  ;;  %v3768_v58 = vpop.permute.xlu1 %1712  ;;  %v3787_v32 = vmul.f32 %v1049_v39, %v3639_v25  ;;  %v1094_v25 = vmul.f32 %v1029_v31, %v3588_v57 }
 0x184   : > { %v1099_v57 = vmul.f32 %v1054_v5, %v3669_v23  ;;  %v1101_v23 = vmul.f32 %v3715_v60, %v3682_v51  ;;  %v4056_v31 = vpack.c.bf16 %v3506_v40, %v3513_v62  ;;  %v4058_v51 = vpack.c.bf16 %v3532_v8, %v3540_v12 }
 0x185   : > { %v4060_v40 = vpack.c.bf16 %v3585_v50, %v3595_v56  ;;  %v4063_v50 = vpack.c.bf16 %v3656_v44, %v3666_v36 }
 0x187   : > { %1882 = vrot.lane.b32.xlu0 %v3728_v0, %s3113_s10 }
 0x18b   : > { %1880 = vrot.lane.b32.xlu0 %v3733_v2, %s3113_s10 }
 0x18f   : > { %3012 = vrot.lane.b32.xlu0 %v3011_v20, %s3112_s9  ;;  %v1089_v20 = vmul.f32 %v1004_v27, %v3543_v18  ;;  %v3776_v18 = vpop.permute.xlu0 %2977  ;;  %v1091_v27 = vmul.f32 %v1014_v42, %v3567_v41  ;;  %v1093_v42 = vmul.f32 %v3708_v46, %v3598_v55  ;;  %v1102_v55 = vmul.f32 %v1069_v43, %v3678_v37 }
 0x190   : > { %v4057_v37 = vmov 0.0|0.0  }
 0x192   : > { %3027 = vrot.lane.b32.xlu1 %v3026_v35, %s3112_s9  ;;  %v3779_v35 = vpop.permute.xlu1 %1710 }
 0x193   : > { %1886 = vrot.lane.b32.xlu0 %v3746_v1, %s3113_s10  ;;  %v3790_v33 = vpop.permute.xlu0 %1550 }
 0x196   : > { %2052 = vrot.lane.b32.xlu1 %v3757_v63, %s3113_s10 }
 0x197   : > { %1884 = vrot.lane.b32.xlu0 %v1089_v20, %s3113_s10  ;;  %v3806_v41 = vpop.permute.xlu0 %1548 }
 0x19a   : > { %2050 = vrot.lane.b32.xlu1 %v3766_v10, %s3113_s10 }
 0x19b   : > { %3017 = vrot.lane.b32.xlu0 %v3016_v49, %s3112_s9  ;;  %v3798_v49 = vpop.permute.xlu1 %2992  ;;  %v3819_v24 = vpop.permute.xlu0 %2982 }
 0x19e   : > { %3032 = vrot.lane.b32.xlu1 %v3031_v15, %s3112_s9 }
 0x19f   : > { %1890 = vrot.lane.b32.xlu0 %v1092_v22, %s3113_s10  ;;  %v3809_v15 = vpop.permute.xlu1 %1716 }
 0x1a2   : > { %2056 = vrot.lane.b32.xlu1 %v3787_v32, %s3113_s10 }
 0x1a3   : > { %1888 = vrot.lane.b32.xlu0 %v1091_v27, %s3113_s10 }
 0x1a6   : > { %2054 = vrot.lane.b32.xlu1 %v3796_v34, %s3113_s10 }
 0x1a7   : > { %3022 = vrot.lane.b32.xlu0 %v3021_v6, %s3112_s9  ;;  %v3824_v6 = vpop.permute.xlu1 %1714 }
 0x1aa   : > { %3037 = vrot.lane.b32.xlu1 %v3036_v59, %s3112_s9  ;;  %v3827_v59 = vpop.permute.xlu0 %1554 }
 0x1ab   : > { %1894 = vrot.lane.b32.xlu0 %v1094_v25, %s3113_s10  ;;  %v3829_v14 = vpop.permute.xlu1 %2997 }
 0x1ae   : > { %2060 = vrot.lane.b32.xlu1 %v1100_v29, %s3113_s10  ;;  %v1553_v54 = vpop.permute.xlu0 %1552 }
 0x1af   : > { %1892 = vrot.lane.b32.xlu0 %v1093_v42, %s3113_s10  ;;  %v3839_v46 = vpop.permute.xlu1 %1720 }
 0x1b2   : > { %2058 = vrot.lane.b32.xlu1 %v1099_v57, %s3113_s10 }
 0x1b6   : > { %3042 = vrot.lane.b32.xlu1 %v3041_v13, %s3112_s9  ;;  %v3849_v13 = vpop.permute.xlu1 %1718 }
 0x1ba   : > { %2064 = vrot.lane.b32.xlu1 %v1102_v55, %s3113_s10  ;;  %v3855_v60 = vpop.permute.xlu1 %3002 }
 0x1be   : > { %v1119_v5 = vpop.trf.xlu0  ;;  %2062 = vrot.lane.b32.xlu1 %v1101_v23, %s3113_s10  ;;  %v3866_v62 = vpop.permute.xlu1 %1724 }
 0x1bf   : > { %2670 = vmatmul.mubr.msk.f32.vlgmr.msra.gmra.mrb[32].mxu0 %vm1135_vm2, %v1119_v5  ;;  %v2999_v5 = vunpack.i.l.bf16 %v3829_v14 }
 0x1c0   : > { %2847 = vmatpush3.bf16.msra.mxu0 %v4056_v31  ;;  %2707 = vmatprep.mubr.msk.f32.mxu0 %vm3114_vm1, %v3115_v17 }
 0x1c1   : > { %2848 = vmatprep.subr.bf16.mxu0 %v4057_v37 }
 0x1c2   : > { %v1723_v8 = vpop.permute.xlu1 %1722 }
 0x1c4   : > { %2850 = vmatpush3.bf16.msra.mxu0 %v4058_v51 }
 0x1c5   : > { %2851 = vmatprep.subr.bf16.mxu0 %v4057_v37 }
 0x1c8   : > { %2853 = vmatpush3.bf16.msra.mxu0 %v4059_v53 }
 0x1c9   : > { %2854 = vmatprep.subr.bf16.mxu0 %v4057_v37 }
 0x1cc   : > { %2856 = vmatpush3.bf16.msra.mxu0 %v4060_v40  ;;  %v3005_v40 = vunpack.i.h.bf16 %v3855_v60 }
 0x1cd   : > { %1318 = vxpose.xlu0.b32.start [1/8] (short) (narrow) %v3733_v2, 8  ;;  %2869 = vmatprep.subr.bf16.mxu0 %v4057_v37 }
 0x1d1   : > { %1319 = vxpose.xlu0.b32.cont [2/8] (short) (narrow) %v3728_v0, 8 }
 0x1d5   : > { %1320 = vxpose.xlu0.b32.cont [3/8] (short) (narrow) %v1089_v20, 8 }
 0x1d8   : > { %v1227_v12 = vpop.trf.xlu1 }
 0x1d9   : > { %1321 = vxpose.xlu0.b32.cont [4/8] (short) (narrow) %v3746_v1, 8  ;;  %2689 = vmatmul.mubr.msk.f32.vlgmr.msra.gmra.mrb[32].mxu1 %vm1135_vm2, %v1227_v12 }
 0x1da   : > { %2859 = vmatpush3.bf16.msra.mxu1 %v4061_v30  ;;  %2726 = vmatprep.mubr.msk.f32.mxu1 %vm3114_vm1, %v3115_v17 }
 0x1db   : > { %2860 = vmatprep.subr.bf16.mxu1 %v4057_v37 }
 0x1dd   : > { %1322 = vxpose.xlu0.b32.cont [5/8] (short) (narrow) %v1091_v27, 8  ;;  %v2975_v27 = vunpack.i.h.bf16 %v3735_v26 }
 0x1de   : > { %2862 = vmatpush3.bf16.msra.mxu1 %v4062_v38 }
 0x1df   : > { %2863 = vmatprep.subr.bf16.mxu1 %v4057_v37 }
 0x1e1   : > { %1323 = vxpose.xlu0.b32.cont [6/8] (short) (narrow) %v1092_v22, 8  ;;  %v2970_v22 = vunpack.i.h.bf16 %v3717_v19 }
 0x1e2   : > { %2865 = vmatpush3.bf16.msra.mxu1 %v4063_v50 }
 0x1e3   : > { %2866 = vmatprep.subr.bf16.mxu1 %v4057_v37 }
 0x1e5   : > { %1324 = vxpose.xlu0.b32.cont [7/8] (short) (narrow) %v1093_v42, 8 }
 0x1e6   : > { %2868 = vmatpush3.bf16.msra.mxu1 %v2867_v3 }
 0x1e7   : > { %1425 = vxpose.xlu1.b32.start [1/8] (short) (narrow) %v3766_v10, 8  ;;  %2881 = vmatprep.subr.bf16.mxu1 %v4057_v37 }
 0x1e9   : > { %1325 = vxpose.xlu0.b32.end [8/8] (short) (narrow) %v1094_v25, 8  ;;  %v2980_v25 = vunpack.i.h.bf16 %v3776_v18 }
 0x1eb   : > { %1426 = vxpose.xlu1.b32.cont [2/8] (short) (narrow) %v3757_v63, 8 }
 0x1ed   : > { %1564 = vxpose.xlu0.b32.start [1/8] (short) (narrow) %v3725_v45, 8 }
 0x1ef   : > { %1427 = vxpose.xlu1.b32.cont [3/8] (short) (narrow) %v3796_v34, 8 }
 0x1f1   : > { %1565 = vxpose.xlu0.b32.cont [2/8] (short) (narrow) %v3719_v48, 8 }
 0x1f3   : > { %1428 = vxpose.xlu1.b32.cont [4/8] (short) (narrow) %v3787_v32, 8 }
 0x1f5   : > { %1566 = vxpose.xlu0.b32.cont [3/8] (short) (narrow) %v3760_v16, 8  ;;  %v3896_v56 = vpop.permute.xlu0 %3007 }
 0x1f7   : > { %1429 = vxpose.xlu1.b32.cont [5/8] (short) (narrow) %v1099_v57, 8  ;;  %v2990_v57 = vunpack.i.h.bf16 %v3748_v7 }
 0x1f9   : > { %1567 = vxpose.xlu0.b32.cont [4/8] (short) (narrow) %v3743_v47, 8  ;;  %v1883_v3 = vpop.permute.xlu0 %1882 }
 0x1fb   : > { %1430 = vxpose.xlu1.b32.cont [6/8] (short) (narrow) %v1100_v29, 8  ;;  %v2984_v29 = vunpack.i.l.bf16 %v3819_v24 }
 0x1fd   : > { %1568 = vxpose.xlu0.b32.cont [5/8] (short) (narrow) %v3806_v41, 8  ;;  %v1881_v21 = vpop.permute.xlu0 %1880 }
 0x1ff   : > { %1431 = vxpose.xlu1.b32.cont [7/8] (short) (narrow) %v1101_v23, 8  ;;  %v3009_v23 = vunpack.i.l.bf16 %v3896_v56 }
 0x201   : > { %1569 = vxpose.xlu0.b32.cont [6/8] (short) (narrow) %v3790_v33, 8  ;;  %v3901_v11 = vpop.permute.xlu0 %3012  ;;  %v2974_v33 = vunpack.i.l.bf16 %v3735_v26  ;;  %v2985_v26 = vunpack.i.h.bf16 %v3819_v24  ;;  %v3010_v24 = vunpack.i.h.bf16 %v3896_v56 }
 0x203   : > { %1432 = vxpose.xlu1.b32.end [8/8] (short) (narrow) %v1102_v55, 8  ;;  %v2873_v41 = vpack.c.bf16 %v2975_v27, %v2974_v33  ;;  %v2879_v42 = vpack.c.bf16 %v2985_v26, %v2984_v29  ;;  %v2994_v55 = vunpack.i.l.bf16 %v3798_v49  ;;  %v2894_v31 = vpack.c.bf16 %v3010_v24, %v3009_v23 }
 0x204   : > { %v3903_v28 = vpop.permute.xlu1 %3027 }
 0x205   : > { %1570 = vxpose.xlu0.b32.cont [7/8] (short) (narrow) %v1553_v54, 8  ;;  %v1887_v61 = vpop.permute.xlu0 %1886 }
 0x207   : > { %1734 = vxpose.xlu1.b32.start [1/8] (short) (narrow) %v3779_v35, 8  ;;  %v2969_v35 = vunpack.i.l.bf16 %v3717_v19 }
 0x208   : > { %v2053_v4 = vpop.permute.xlu1 %2052 }
 0x209   : > { %1571 = vxpose.xlu0.b32.end [8/8] (short) (narrow) %v3827_v59, 8  ;;  %v1885_v44 = vpop.permute.xlu0 %1884  ;;  %v2870_v32 = vpack.c.bf16 %v2970_v22, %v2969_v35  ;;  %v2995_v59 = vunpack.i.h.bf16 %v3798_v49  ;;  %v3015_v49 = vunpack.i.h.bf16 %v3901_v11 }
 0x20b   : > { %1735 = vxpose.xlu1.b32.cont [2/8] (short) (narrow) %v3768_v58, 8 }
 0x20c   : > { %v2051_v36 = vpop.permute.xlu1 %2050 }
 0x20d   : > { %1904 = vxpose.xlu0.b32.start [1/8] (short) (narrow) %v1881_v21, 8  ;;  %v3908_v9 = vpop.permute.xlu0 %3017  ;;  %v3029_v21 = vunpack.i.l.bf16 %v3903_v28 }
 0x20e   : > { %v3019_v12 = vunpack.i.l.bf16 %v3908_v9 }
 0x20f   : > { %1736 = vxpose.xlu1.b32.cont [3/8] (short) (narrow) %v3824_v6, 8  ;;  %v2989_v6 = vunpack.i.l.bf16 %v3748_v7  ;;  %v3000_v7 = vunpack.i.h.bf16 %v3829_v14 }
 0x210   : > { %v3911_v48 = vpop.permute.xlu1 %3032 }
 0x211   : > { %1905 = vxpose.xlu0.b32.cont [2/8] (short) (narrow) %v1883_v3, 8  ;;  %v1891_v39 = vpop.permute.xlu0 %1890  ;;  %v2888_v53 = vpack.c.bf16 %v3000_v7, %v2999_v5  ;;  %v3030_v3 = vunpack.i.h.bf16 %v3903_v28 }
 0x213   : > { %1737 = vxpose.xlu1.b32.cont [4/8] (short) (narrow) %v3809_v15, 8  ;;  %v2979_v15 = vunpack.i.l.bf16 %v3776_v18  ;;  %v2882_v18 = vpack.c.bf16 %v2990_v57, %v2989_v6 }
 0x214   : > { %v2057_v45 = vpop.permute.xlu1 %2056 }
 0x215   : > { %1906 = vxpose.xlu0.b32.cont [3/8] (short) (narrow) %v1885_v44, 8  ;;  %v1889_v0 = vpop.permute.xlu0 %1888  ;;  %v2876_v19 = vpack.c.bf16 %v2980_v25, %v2979_v15 }
 0x217   : > { %1738 = vxpose.xlu1.b32.cont [5/8] (short) (narrow) %v3849_v13, 8  ;;  %v3014_v13 = vunpack.i.l.bf16 %v3901_v11  ;;  %v2906_v11 = vpack.c.bf16 %v3030_v3, %v3029_v21 }
 0x218   : > { %v2055_v2 = vpop.permute.xlu1 %2054 }
 0x219   : > { %1907 = vxpose.xlu0.b32.cont [4/8] (short) (narrow) %v1887_v61, 8  ;;  %v3915_v52 = vpop.permute.xlu0 %3022  ;;  %v2897_v14 = vpack.c.bf16 %v3015_v49, %v3014_v13  ;;  %v3035_v61 = vunpack.i.h.bf16 %v3911_v48 }
 0x21a   : > { %v3024_v50 = vunpack.i.l.bf16 %v3915_v52 }
 0x21b   : > { %1739 = vxpose.xlu1.b32.cont [6/8] (short) (narrow) %v3839_v46, 8  ;;  %v2885_v46 = vpack.c.bf16 %v2995_v59, %v2994_v55 }
 0x21c   : > { %v3918_v47 = vpop.permute.xlu1 %3037 }
 0x21d   : > { %1908 = vxpose.xlu0.b32.cont [5/8] (short) (narrow) %v1889_v0, 8  ;;  %v1895_v43 = vpop.permute.xlu0 %1894  ;;  %v3039_v28 = vunpack.i.l.bf16 %v3918_v47 }
 0x21f   : > { %1740 = vxpose.xlu1.b32.cont [7/8] (short) (narrow) %v1723_v8, 8  ;;  %v3020_v8 = vunpack.i.h.bf16 %v3908_v9  ;;  %v3040_v9 = vunpack.i.h.bf16 %v3918_v47 }
 0x220   : > { %v2061_v63 = vpop.permute.xlu1 %2060 }
 0x221   : > { %1909 = vxpose.xlu0.b32.cont [6/8] (short) (narrow) %v1891_v39, 8  ;;  %v1893_v1 = vpop.permute.xlu0 %1892  ;;  %v2900_v38 = vpack.c.bf16 %v3020_v8, %v3019_v12 }
 0x223   : > { %1741 = vxpose.xlu1.b32.end [8/8] (short) (narrow) %v3866_v62, 8  ;;  %v3004_v62 = vunpack.i.l.bf16 %v3855_v60  ;;  %v3025_v60 = vunpack.i.h.bf16 %v3915_v52 }
 0x224   : > { %v2059_v20 = vpop.permute.xlu1 %2058 }
 0x225   : > { %1910 = vxpose.xlu0.b32.cont [7/8] (short) (narrow) %v1893_v1, 8  ;;  %v2891_v30 = vpack.c.bf16 %v3005_v40, %v3004_v62  ;;  %v2903_v56 = vpack.c.bf16 %v3025_v60, %v3024_v50 }
 0x227   : > { %2074 = vxpose.xlu1.b32.start [1/8] (short) (narrow) %v2051_v36, 8 }
 0x228   : > { %v3921_v16 = vpop.permute.xlu1 %3042 }
 0x229   : > { %1911 = vxpose.xlu0.b32.end [8/8] (short) (narrow) %v1895_v43, 8 }
 0x22b   : > { %2075 = vxpose.xlu1.b32.cont [2/8] (short) (narrow) %v2053_v4, 8  ;;  %v3034_v4 = vunpack.i.l.bf16 %v3911_v48  ;;  %v2912_v48 = vpack.c.bf16 %v3040_v9, %v3039_v28 }
 0x22c   : > { %v2065_v10 = vpop.permute.xlu1 %2064 }
 0x22d   : > { %v2909_v36 = vpack.c.bf16 %v3035_v61, %v3034_v4 }
 0x22f   : > { %2076 = vxpose.xlu1.b32.cont [3/8] (short) (narrow) %v2055_v2, 8 }
 0x230   : > { %v2063_v58 = vpop.permute.xlu1 %2062 }
 0x233   : > { %2077 = vxpose.xlu1.b32.cont [4/8] (short) (narrow) %v2057_v45, 8  ;;  %v3045_v45 = vunpack.i.h.bf16 %v3921_v16 }
 0x237   : > { %2078 = vxpose.xlu1.b32.cont [5/8] (short) (narrow) %v2059_v20, 8 }
 0x23b   : > { %2079 = vxpose.xlu1.b32.cont [6/8] (short) (narrow) %v2061_v63, 8 }
 0x23f   : > { %2080 = vxpose.xlu1.b32.cont [7/8] (short) (narrow) %v2063_v58, 8 }
 0x243   : > { %2081 = vxpose.xlu1.b32.end [8/8] (short) (narrow) %v2065_v10, 8 }
 0x24d   : > { %v1334_v34 = vpop.trf.xlu0 }
 0x24e   : > { %2708 = vmatmul.mubr.msk.f32.vlgmr.msra.gmra.mrb[34].mxu0 %vm1135_vm2, %v1334_v34 }
 0x24f   : > { %2871 = vmatpush3.bf16.msra.mxu0 %v2870_v32  ;;  %2745 = vmatprep.mubr.msk.f32.mxu0 %vm3114_vm1, %v3115_v17 }
 0x250   : > { %2872 = vmatprep.subr.bf16.mxu0 %v4057_v37 }
 0x253   : > { %2874 = vmatpush3.bf16.msra.mxu0 %v2873_v41 }
 0x254   : > { %2875 = vmatprep.subr.bf16.mxu0 %v4057_v37 }
 0x257   : > { %2877 = vmatpush3.bf16.msra.mxu0 %v2876_v19 }
 0x258   : > { %2878 = vmatprep.subr.bf16.mxu0 %v4057_v37 }
 0x25b   : > { %2880 = vmatpush3.bf16.msra.mxu0 %v2879_v42 }
 0x25c   : > { %2893 = vmatprep.subr.bf16.mxu0 %v4057_v37 }
 0x267   : > { %v1441_v54 = vpop.trf.xlu1 }
 0x268   : > { %2727 = vmatmul.mubr.msk.f32.vlgmr.msra.gmra.mrb[34].mxu1 %vm1135_vm2, %v1441_v54 }
 0x269   : > { %2883 = vmatpush3.bf16.msra.mxu1 %v2882_v18  ;;  %2764 = vmatprep.mubr.msk.f32.mxu1 %vm3114_vm1, %v3115_v17 }
 0x26a   : > { %2884 = vmatprep.subr.bf16.mxu1 %v4057_v37 }
 0x26d   : > { %2886 = vmatpush3.bf16.msra.mxu1 %v2885_v46  ;;  %v1580_v51 = vpop.trf.xlu0 }
 0x26e   : > { %2746 = vmatmul.mubr.msk.f32.vlgmr.msra.gmra.mrb[36].mxu0 %vm1135_vm2, %v1580_v51  ;;  %2887 = vmatprep.subr.bf16.mxu1 %v4057_v37 }
 0x26f   : > { %2895 = vmatpush3.bf16.msra.mxu0 %v2894_v31  ;;  %2783 = vmatprep.mubr.msk.f32.mxu0 %vm3114_vm1, %v3115_v17 }
 0x270   : > { %2896 = vmatprep.subr.bf16.mxu0 %v4057_v37 }
 0x271   : > { %2889 = vmatpush3.bf16.msra.mxu1 %v2888_v53 }
 0x272   : > { %2890 = vmatprep.subr.bf16.mxu1 %v4057_v37 }
 0x273   : > { %2898 = vmatpush3.bf16.msra.mxu0 %v2897_v14 }
 0x274   : > { %2899 = vmatprep.subr.bf16.mxu0 %v4057_v37 }
 0x275   : > { %2892 = vmatpush3.bf16.msra.mxu1 %v2891_v30 }
 0x276   : > { %2905 = vmatprep.subr.bf16.mxu1 %v4057_v37 }
 0x277   : > { %2901 = vmatpush3.bf16.msra.mxu0 %v2900_v38 }
 0x278   : > { %2902 = vmatprep.subr.bf16.mxu0 %v4057_v37 }
 0x27b   : > { %2904 = vmatpush3.bf16.msra.mxu0 %v2903_v56 }
 0x287   : > { %v1750_v44 = vpop.trf.xlu1 }
 0x288   : > { %2765 = vmatmul.mubr.msk.f32.vlgmr.msra.gmra.mrb[36].mxu1 %vm1135_vm2, %v1750_v44 }
 0x289   : > { %2907 = vmatpush3.bf16.msra.mxu1 %v2906_v11  ;;  %2802 = vmatprep.mubr.msk.f32.mxu1 %vm3114_vm1, %v3115_v17  ;;  %v3044_v17 = vunpack.i.l.bf16 %v3921_v16 }
 0x28a   : > { %2908 = vmatprep.subr.bf16.mxu1 %v4057_v37 }
 0x28b   : > { %v2915_v52 = vpack.c.bf16 %v3045_v45, %v3044_v17 }
 0x28d   : > { %2910 = vmatpush3.bf16.msra.mxu1 %v2909_v36  ;;  %v1920_v39 = vpop.trf.xlu0 }
 0x28e   : > { %2911 = vmatprep.subr.bf16.mxu1 %v4057_v37  ;;  %2784 = vmatmul.mubr.msk.f32.vlgmr.msra.gmra.mrb[38].mxu0 %vm1135_vm2, %v1920_v39 }
 0x291   : > { %2913 = vmatpush3.bf16.msra.mxu1 %v2912_v48 }
 0x292   : > { %2914 = vmatprep.subr.bf16.mxu1 %v4057_v37  ;;  %v1205_v0 = vpop.f32.mrb[32].mxu0 }
 0x293   : > { %1210 = vst.msk [vmem:[%s263_s13] sm:$0xf] %vm1209_vm3, %v1205_v0  ;;  %v2671_v2 = vpop.f32.mrb[33].mxu0 }
 0x295   : > { %2916 = vmatpush3.bf16.msra.mxu1 %v2915_v52 }
 0x2a7   : > { %v2090_v43 = vpop.trf.xlu1 }
 0x2a8   : > { %2803 = vmatmul.mubr.msk.f32.vlgmr.msra.gmra.mrb[38].mxu1 %vm1135_vm2, %v2090_v43 }
 0x2ac   : > { %v1312_v47 = vpop.f32.mrb[32].mxu1 }
 0x2ad   : > { %2378 = vst.msk [vmem:[%s263_s13 + $0x8] sm:$0xf] %vm1209_vm3, %v1312_v47  ;;  %v2690_v1 = vpop.f32.mrb[33].mxu1 }
 0x321   : > { %v1419_v63 = vpop.f32.mrb[34].mxu0 }
 0x322   : > { %2380 = vst.msk [vmem:[%s263_s13 + $0x10] sm:$0xf] %vm1209_vm3, %v1419_v63  ;;  %v2709_v20 = vpop.f32.mrb[35].mxu0 }
 0x33b   : > { %v1526_v37 = vpop.f32.mrb[34].mxu1 }
 0x33c   : > { %2382 = vst.msk [vmem:[%s263_s13 + $0x18] sm:$0xf] %vm1209_vm3, %v1526_v37  ;;  %v2728_v16 = vpop.f32.mrb[35].mxu1 }
 0x341   : > { %v1697_v10 = vpop.f32.mrb[36].mxu0 }
 0x342   : > { %1701 = vst.msk [vmem:[%s263_s13 + $0x4] sm:$0xf] %vm1209_vm3, %v1697_v10  ;;  %v2747_v58 = vpop.f32.mrb[37].mxu0 }
 0x35b   : > { %v1867_v22 = vpop.f32.mrb[36].mxu1 }
 0x35c   : > { %2385 = vst.msk [vmem:[%s263_s13 + $0xc] sm:$0xf] %vm1209_vm3, %v1867_v22  ;;  %v2766_v35 = vpop.f32.mrb[37].mxu1 }
 0x361   : > { %v2037_v32 = vpop.f32.mrb[38].mxu0 }
 0x362   : > { %2387 = vst.msk [vmem:[%s263_s13 + $0x14] sm:$0xf] %vm1209_vm3, %v2037_v32  ;;  %v2785_v27 = vpop.f32.mrb[39].mxu0 }
 0x37b   : > { %v2207_v33 = vpop.f32.mrb[38].mxu1 }
 0x37c   : > { %2389 = vst.msk [vmem:[%s263_s13 + $0x1c] sm:$0xf] %vm1209_vm3, %v2207_v33  ;;  %v2804_v34 = vpop.f32.mrb[39].mxu1 }
 0x37d   : > { %3059 = shalt.err (!%p3056_p4)
}
 0x37e   : > { %s3060_s29 = scalar_lea.hbm %s3997_s18, 512  ;;  %s3064_s11 = scalar_lea.hbm %s4051_s6, 1024 }
 0x37f   : > { %p3061_p7 = scmp.ne.s32.totalorder %s3997_s18, %s3060_s29  ;;  %p3065_p10 = scmp.lt.u32.totalorder %s3997_s18, %s4051_s6 }
 0x380   : > { %p3066_p11 = scmp.lt.u32.totalorder %s3064_s11, %s3060_s29  ;;  %p3068_p13 = scmp.lt.u32.totalorder %s3060_s29, %s3997_s18 }
 0x381   : > { %p3062_p8 = pnand %p3061_p7, %p3192_p5 }
 0x382   : > { %p3067_p12 = por %p3066_p11, %p3065_p10 }
 0x383   : > { %p3063_p9 = pneg %p3062_p8 }
 0x384   : > { %p3069_p0 = por %p3068_p13, %p3067_p12 }
 0x386   : > { %p3070_p1 = pnand %p3069_p0, %p3063_p9 }
 0x388   : > { %3073 = shalt.err (!%p3070_p1)
}
 0x389   : > { %s3117_s14 = smov 128   ;;  %s3118_s17 = smov 8  }
 0x38a   : > { %2917 = dma.vmem_to_hbm [thread:$0]  (%p3192_p5), %s3999_s16, 512, %s3997_s18, %s4004_s19, %s3117_s14, %s3117_s14, %s3118_s17  }
 0x38b PF: > { %p2923_p2 = scmp.ge.s32.totalorder %s3108_s24, 2  ;;  %s2241_s15 = sand.u32 1, %s3096_s21  }
 0x38c   : > { %s2242_s20 = scalar_lea.sflag [#allocation3], %s2241_s15 }
 0x38d   : > { %p2920_p3 = pnand %p2923_p2, %p3196_p6 }
 0x38f   : > { %3091 = dma.done.wait (!%p2920_p3), %s2242_s20, 512  }
 0x390   : > { %3093 = vsyncadd (!%p2920_p3), %s2242_s20, 4294966784  ;;  %p16_p4 = scmp.ge.s32.totalorder %s3179_s27, 4   ;;  %s4064_s21 = smov %s3100_s22 }
 0x391   : > { %s4065_s22 = smov %s3104_s23  ;;  %s4066_s23 = smov %s3190_s30 }
 0x392   : > { %s4067_s24 = smov %s3179_s27  ;;  %18 = sbr.rel (!%p16_p4) target bundleno = 3 (0x3), region = 85 }
 0x399   :  { %2247 = vsyncpa [#allocation3], 1 }
 0x39a   :  { %2249 = vsyncpa [#allocation3 + $0x1], 1 }

</bundles_post_ra>
